<compile_context>
chip_gen: v7x
topology: tpu7x:2x2x1
jax: 0.10.0
libtpu: 0.0.40
codegen_flags: <defaults>
</compile_context>

<pallas_src>
import jax
import jax.numpy as jnp
from jax import lax
from jax.experimental import pallas as pl
from jax.experimental.pallas import tpu as pltpu

EPS = 1e-5   # InstanceNorm2d default eps


# ----------------------------------------------------------------------------
# In-kernel helpers (channels-first: features are (C, E))
# ----------------------------------------------------------------------------
def _instance_norm(y):
    # InstanceNorm2d(affine=False): normalize over the edge (spatial) axis per
    # channel.  Single pass: var = E[x^2] - mean^2.  Lane-axis reduce (XLU).
    mean = jnp.mean(y, axis=-1, keepdims=True)
    m2 = jnp.mean(y * y, axis=-1, keepdims=True)
    var = jnp.maximum(m2 - mean * mean, 0.0)
    return (y - mean) * lax.rsqrt(var + EPS)


def _sym_gather_feats(x, gemm):
    """x: (Ci, E) f32, gemm: (4, E) int32 (-1 = missing neighbor).
    Returns (5*Ci, E) f32 = [x; n1+n3; n2+n4; |n1-n3|; |n2-n4|].
    Gathers are one-hot matmuls on the MXU; -1 indices give zero columns."""
    E = x.shape[-1]
    e_in = lax.broadcasted_iota(jnp.int32, (E, E), 0)          # row = source edge

    def oh(k):                                                  # (E_in, E_out) 0/1
        return (e_in == gemm[k:k + 1, :]).astype(jnp.float32)

    def gm(m):                                                  # exact f32 gather
        return jnp.dot(x, m, preferred_element_type=jnp.float32)

    # Build/consume pairwise so at most two (E, E) one-hot matrices are live.
    o1, o3 = oh(0), oh(2)
    s13 = gm(o1 + o3)
    d13 = jnp.abs(gm(o1 - o3))
    o2, o4 = oh(1), oh(3)
    s24 = gm(o2 + o4)
    d24 = jnp.abs(gm(o2 - o4))
    return jnp.concatenate([x, s13, s24, d13, d24], axis=0)


def _mesh_conv(x, gemm, w, bias):
    # MeshConv == Conv2d(Ci, Co, kernel_size=(1,5)) over the symmetric
    # neighborhood, as ONE (Co, 5*Ci) @ (5*Ci, E) MXU matmul (bf16 in, f32 acc).
    g = _sym_gather_feats(x, gemm).astype(jnp.bfloat16)
    return jnp.dot(w, g, preferred_element_type=jnp.float32) + bias


def _unpool(y, src, inv_occ):
    # MeshUnpool: every output edge copies its source edge (one-hot matmul
    # gather), scaled by 1/occurrences.
    # y: (Cm, E_in), src: (1, E_out) int32, inv_occ: (1, E_out) f32.
    E_in, E_out = y.shape[-1], src.shape[-1]
    e_in = lax.broadcasted_iota(jnp.int32, (E_in, E_out), 0)
    U = (e_in == src).astype(jnp.float32)
    return jnp.dot(y, U, preferred_element_type=jnp.float32) * inv_occ


# ----------------------------------------------------------------------------
# Fused UpConv stage (one pallas_call per stage)
# ----------------------------------------------------------------------------
def fused_upconv_stage(fe, from_down, mesh, params, *, n_blocks, residual=True):
    """fe: (B, C_in, E_in) f32; returns (B, C_out, E_out) f32."""
    B, C_in, E_in = fe.shape
    Cm = params["up_w"].shape[0]
    has_unpool = mesh["src"] is not None
    has_transfer = from_down is not None
    E_out = mesh["gemm_out"].shape[-1]

    inputs = [fe, mesh["gemm_in"], mesh["gemm_out"]]
    in_specs = [
        pl.BlockSpec((None, C_in, E_in), lambda b: (b, 0, 0)),
        pl.BlockSpec((None, 4, E_in), lambda b: (b, 0, 0)),
        pl.BlockSpec((None, 4, E_out), lambda b: (b, 0, 0)),
    ]
    if has_unpool:
        inputs += [mesh["src"], mesh["inv_occ"]]
        in_specs += [pl.BlockSpec((None, 1, E_out), lambda b: (b, 0, 0)),
                     pl.BlockSpec((None, 1, E_out), lambda b: (b, 0, 0))]
    if has_transfer:
        inputs.append(from_down)                                # (B, Cm, E_out)
        in_specs.append(pl.BlockSpec((None, Cm, E_out), lambda b: (b, 0, 0)))
    weights = [params["up_w"], params["up_b"], params["conv1_w"], params["conv1_b"]]
    if n_blocks:
        weights += [params["conv2_w"], params["conv2_b"]]
    for w in weights:
        inputs.append(w)
        in_specs.append(pl.BlockSpec(w.shape, lambda b, nd=w.ndim: (0,) * nd))

    def kernel(*refs):
        it = iter(refs)
        fe_r = next(it); gin_r = next(it); gout_r = next(it)
        src_r = invocc_r = fd_r = None
        if has_unpool:
            src_r = next(it); invocc_r = next(it)
        if has_transfer:
            fd_r = next(it)
        upw_r = next(it); upb_r = next(it)
        c1w_r = next(it); c1b_r = next(it)
        c2w_r = c2b_r = None
        if n_blocks:
            c2w_r = next(it); c2b_r = next(it)
        out_r = next(it)

        # up_conv: MeshConv only (no norm / activation), at input resolution.
        y = _mesh_conv(fe_r[...], gin_r[...], upw_r[...], upb_r[...])

        if has_unpool:
            y = _unpool(y, src_r[...], invocc_r[...])

        if has_transfer:
            y = jnp.concatenate([y, fd_r[...]], axis=0)         # skip concat (chan)

        gout = gout_r[...]
        # conv1 -> InstanceNorm -> ReLU (no residual on conv1, per the module).
        y = jnp.maximum(_instance_norm(
            _mesh_conv(y, gout, c1w_r[...], c1b_r[...])), 0.0)

        # conv2 blocks: MeshConv -> InstanceNorm -> (+residual) -> ReLU.
        for j in range(n_blocks):
            y2 = _instance_norm(_mesh_conv(y, gout, c2w_r[j], c2b_r[j]))
            if residual:
                y2 = y2 + y
            y = jnp.maximum(y2, 0.0)

        out_r[...] = y

    grid_spec = pltpu.PrefetchScalarGridSpec(
        num_scalar_prefetch=0,
        grid=(B,),
        in_specs=in_specs,
        out_specs=pl.BlockSpec((None, Cm, E_out), lambda b: (b, 0, 0)),
        scratch_shapes=())

    return pl.pallas_call(
        kernel,
        out_shape=jax.ShapeDtypeStruct((B, Cm, E_out), jnp.float32),
        grid_spec=grid_spec,
        compiler_params=pltpu.CompilerParams(
            dimension_semantics=("parallel",)),   # v7x: 2 TensorCores split batch
    )(*inputs)


# ----------------------------------------------------------------------------
# Pure-JAX reference (same bf16-matmul / f32-accumulate math, exact gathers)
# ----------------------------------------------------------------------------
def _mesh_conv_ref(x, gemm, w, bias):
    # x: (B, Ci, E); gemm: (B, 4, E); w: (Co, 5*Ci) bf16; bias: (Co, 1) f32.
    valid = (gemm >= 0).astype(x.dtype)[:, None, :, :]              # (B,1,4,E)
    idx = jnp.maximum(gemm, 0)
    nb = jax.vmap(lambda xb, ib: xb[:, ib])(x, idx) * valid         # (B,Ci,4,E)
    n1, n2, n3, n4 = nb[:, :, 0], nb[:, :, 1], nb[:, :, 2], nb[:, :, 3]
    g = jnp.concatenate(
        [x, n1 + n3, n2 + n4, jnp.abs(n1 - n3), jnp.abs(n2 - n4)], axis=1)
    y = jnp.einsum("ok,bke->boe", w, g.astype(jnp.bfloat16),
                   preferred_element_type=jnp.float32)
    return y + bias


def _instance_norm_ref(y):
    mean = jnp.mean(y, axis=2, keepdims=True)
    m2 = jnp.mean(y * y, axis=2, keepdims=True)
    var = jnp.maximum(m2 - mean * mean, 0.0)
    return (y - mean) * lax.rsqrt(var + EPS)


def upconv_stage_ref(fe, from_down, mesh, params, *, n_blocks, residual=True):
    y = _mesh_conv_ref(fe, mesh["gemm_in"], params["up_w"], params["up_b"])
    if mesh["src"] is not None:
        y = jax.vmap(lambda yb, sb: yb[:, sb])(y, mesh["src"][:, 0]) * mesh["inv_occ"]
    if from_down is not None:
        y = jnp.concatenate([y, from_down], axis=1)
    y = _mesh_conv_ref(y, mesh["gemm_out"], params["conv1_w"], params["conv1_b"])
    x1 = jnp.maximum(_instance_norm_ref(y), 0.0)
    for j in range(n_blocks):
        y2 = _mesh_conv_ref(x1, mesh["gemm_out"], params["conv2_w"][j],
                            params["conv2_b"][j])
        y2 = _instance_norm_ref(y2)
        if residual:
            y2 = y2 + x1
        x1 = jnp.maximum(y2, 0.0)
    return x1


# ----------------------------------------------------------------------------
# Decoder glue (PyTorch (B, C, E) layout throughout; no transposes needed)
# ----------------------------------------------------------------------------
def mesh_decoder_apply(fe, meshes, encoder_outs, params, stage_fn, n_blocks):
    n_up = len(params["up_convs"])
    for i in range(n_up):
        before_pool = encoder_outs[-(i + 2)] if encoder_outs is not None else None
        fe = stage_fn(fe, before_pool, meshes[i], params["up_convs"][i],
                      n_blocks=n_blocks)
    fe = stage_fn(fe, None, meshes[n_up], params["final"], n_blocks=n_blocks)
    return fe


# ----------------------------------------------------------------------------
# Deterministic parameter / mesh-data construction
# TODO(synk): Mesh.unroll_gemm() in-place mesh mutation and MeshUnpool group
#             construction from Mesh objects are modeled with precomputed
#             per-level neighbor tables and unpool source-index / 1/occurrence
#             arrays (there is no Pallas equivalent of the dynamic Mesh object).
# ----------------------------------------------------------------------------
def _xavier_conv_weight(key, ci, co):
    # nn.init.xavier_normal_ on Conv2d weight (co, ci, 1, 5); stored flattened as
    # (co, 5*ci) so the whole MeshConv is one matmul.  bf16 (MXU native).
    std = (2.0 / (ci * 5 + co * 5)) ** 0.5
    w = std * jax.random.normal(key, (co, 5 * ci), jnp.float32)
    return w.astype(jnp.bfloat16)


def make_upconv_params(key, cin, cout, blocks, transfer_data):
    keys = jax.random.split(key, 2 + max(blocks, 1))
    c1_in = 2 * cout if transfer_data else cout
    p = dict(
        up_w=_xavier_conv_weight(keys[0], cin, cout),
        up_b=jnp.zeros((cout, 1), jnp.float32),          # init.constant_(bias, 0)
        conv1_w=_xavier_conv_weight(keys[1], c1_in, cout),
        conv1_b=jnp.zeros((cout, 1), jnp.float32),
    )
    if blocks:
        p["conv2_w"] = jnp.stack(
            [_xavier_conv_weight(keys[2 + i], cout, cout) for i in range(blocks)])
        p["conv2_b"] = jnp.zeros((blocks, cout, 1), jnp.float32)
    return p


def make_meshes(key, B, E0, unrolls, n_up):
    E_list = [E0]
    unroll_list = []
    for i in range(n_up):
        u = unrolls[i] if i < len(unrolls) else 0
        unroll_list.append(u)
        E_list.append(u if u else E_list[-1])

    def rand_gemm(k, E):
        k1, k2 = jax.random.split(k)
        g = jax.random.randint(k1, (B, 4, E), 0, E, dtype=jnp.int32)
        # sprinkle a few -1 "no neighbor" pads to exercise the masking path
        return jnp.where(jax.random.uniform(k2, (B, 4, E)) < 0.05, -1, g)

    keys = iter(jax.random.split(key, 4 * (n_up + 1) + 4))
    gemm_state = [rand_gemm(next(keys), E0)]
    src_list, occ_list = [], []
    for i in range(n_up):
        Ein, Eout = E_list[i], E_list[i + 1]
        if unroll_list[i]:
            src_list.append(jax.random.randint(next(keys), (B, 1, Eout), 0, Ein,
                                               dtype=jnp.int32))
            occ = jax.random.randint(next(keys), (B, 1, Eout), 1, 3)
            occ_list.append(1.0 / occ.astype(jnp.float32))
            gemm_state.append(rand_gemm(next(keys), Eout))
        else:
            src_list.append(None)
            occ_list.append(None)
            gemm_state.append(gemm_state[-1])
    meshes = [dict(gemm_in=gemm_state[i], gemm_out=gemm_state[i + 1],
                   src=src_list[i], inv_occ=occ_list[i]) for i in range(n_up)]
    # final_conv: unroll=False -> mesh topology unchanged
    meshes.append(dict(gemm_in=gemm_state[n_up], gemm_out=gemm_state[n_up],
                       src=None, inv_occ=None))
    return meshes, E_list


# ----------------------------------------------------------------------------
if __name__ == "__main__":
    key = jax.random.PRNGKey(0)
    B = 2
    convs = [16, 8, 8, 4]          # MeshDecoder(unrolls, convs, blocks=1)
    unrolls = [24, 32]
    blocks = 1
    E0 = 16
    n_up = len(convs) - 2

    k_mesh, k_par, k_fe, k_enc = jax.random.split(key, 4)
    meshes, E_list = make_meshes(k_mesh, B, E0, unrolls, n_up)

    pkeys = jax.random.split(k_par, n_up + 1)
    params = dict(
        up_convs=[make_upconv_params(pkeys[i], convs[i], convs[i + 1], blocks, True)
                  for i in range(n_up)],
        final=make_upconv_params(pkeys[-1], convs[-2], convs[-1], blocks, False),
    )

    # decoder input fe: (B, C, E) and encoder skip connections (before-pool feats)
    fe = jax.random.normal(k_fe, (B, convs[0], E0), jnp.float32)
    ekeys = jax.random.split(k_enc, n_up + 1)
    encoder_outs = [None] * (n_up + 1)
    for i in range(n_up):
        encoder_outs[-(i + 2)] = jax.random.normal(
            ekeys[i], (B, convs[i + 1], E_list[i + 1]), jnp.float32)
    encoder_outs[-1] = jax.random.normal(ekeys[-1], (B, convs[0], E0), jnp.float32)

    out = mesh_decoder_apply(fe, meshes, encoder_outs, params,
                             fused_upconv_stage, blocks)
    out = jax.block_until_ready(out)

    ref = mesh_decoder_apply(fe, meshes, encoder_outs, params,
                             upconv_stage_ref, blocks)
    assert out.shape == (B, convs[-1], E_list[-1]), out.shape
    # Both paths use bf16 MXU matmuls with f32 accumulation; gathers are exact
    # (one-hot f32 matmuls in the kernel, indexing in the reference).
    err = float(jnp.max(jnp.abs(out - ref)))
    assert jnp.allclose(out, ref, atol=5e-3, rtol=5e-3), err
    print("KERNEL_OK")
</pallas_src>

<mosaic_0001>
module attributes {stable_mosaic.version = 11 : i64} {
  func.func @kernel(%arg0: i32, %arg1: memref<1x16x16xf32, #tpu.memory_space<vmem>>, %arg2: memref<1x4x16xi32, #tpu.memory_space<vmem>>, %arg3: memref<1x4x24xi32, #tpu.memory_space<vmem>>, %arg4: memref<1x1x24xi32, #tpu.memory_space<vmem>>, %arg5: memref<1x1x24xf32, #tpu.memory_space<vmem>>, %arg6: memref<1x8x24xf32, #tpu.memory_space<vmem>>, %arg7: memref<8x80xbf16, #tpu.memory_space<vmem>>, %arg8: memref<8x1xf32, #tpu.memory_space<vmem>>, %arg9: memref<8x80xbf16, #tpu.memory_space<vmem>>, %arg10: memref<8x1xf32, #tpu.memory_space<vmem>>, %arg11: memref<1x8x40xbf16, #tpu.memory_space<vmem>>, %arg12: memref<1x8x1xf32, #tpu.memory_space<vmem>>, %arg13: memref<1x8x24xf32, #tpu.memory_space<vmem>>) attributes {dimension_semantics = [#tpu.dimension_semantics<parallel>], iteration_bounds = array<i64: 2>, scalar_prefetch = 0 : i64, scratch_operands = 0 : i64, tpu.core_type = #tpu.core_type<tc>, window_params = [{transform_indices = @transform_0, window_bounds = array<i64: 1, 16, 16>}, {transform_indices = @transform_1, window_bounds = array<i64: 1, 4, 16>}, {transform_indices = @transform_2, window_bounds = array<i64: 1, 4, 24>}, {transform_indices = @transform_3, window_bounds = array<i64: 1, 1, 24>}, {transform_indices = @transform_4, window_bounds = array<i64: 1, 1, 24>}, {transform_indices = @transform_5, window_bounds = array<i64: 1, 8, 24>}, {pipeline_mode = #tpu.pipeline_mode<synchronous>, transform_indices = @transform_6, window_bounds = array<i64: 8, 80>}, {pipeline_mode = #tpu.pipeline_mode<synchronous>, transform_indices = @transform_7, window_bounds = array<i64: 8, 1>}, {pipeline_mode = #tpu.pipeline_mode<synchronous>, transform_indices = @transform_8, window_bounds = array<i64: 8, 80>}, {pipeline_mode = #tpu.pipeline_mode<synchronous>, transform_indices = @transform_9, window_bounds = array<i64: 8, 1>}, {pipeline_mode = #tpu.pipeline_mode<synchronous>, transform_indices = @transform_10, window_bounds = array<i64: 1, 8, 40>}, {pipeline_mode = #tpu.pipeline_mode<synchronous>, transform_indices = @transform_11, window_bounds = array<i64: 1, 8, 1>}, {transform_indices = @transform_12, window_bounds = array<i64: 1, 8, 24>}]} {
    %c0 = arith.constant 0 : index
    %c0_0 = arith.constant 0 : index
    %c0_1 = arith.constant 0 : index
    %0 = vector.load %arg1[%c0, %c0_0, %c0_1] : memref<1x16x16xf32, #tpu.memory_space<vmem>>, vector<1x16x16xf32>
    %1 = vector.shape_cast %0 : vector<1x16x16xf32> to vector<16x16xf32>
    %c0_2 = arith.constant 0 : index
    %c0_3 = arith.constant 0 : index
    %c0_4 = arith.constant 0 : index
    %2 = vector.load %arg2[%c0_2, %c0_3, %c0_4] : memref<1x4x16xi32, #tpu.memory_space<vmem>>, vector<1x4x16xi32>
    %3 = vector.shape_cast %2 : vector<1x4x16xi32> to vector<4x16xi32>
    %c0_5 = arith.constant 0 : index
    %c0_6 = arith.constant 0 : index
    %4 = vector.load %arg7[%c0_5, %c0_6] : memref<8x80xbf16, #tpu.memory_space<vmem>>, vector<8x80xbf16>
    %c0_7 = arith.constant 0 : index
    %c0_8 = arith.constant 0 : index
    %5 = vector.load %arg8[%c0_7, %c0_8] : memref<8x1xf32, #tpu.memory_space<vmem>>, vector<8x1xf32>
    %6 = tpu.iota {dimensions = array<i32: 0>} : vector<16x16xi32>
    %7 = vector.extract_strided_slice %3 {offsets = [0, 0], sizes = [1, 16], strides = [1, 1]} : vector<4x16xi32> to vector<1x16xi32>
    %8 = vector.broadcast %7 : vector<1x16xi32> to vector<16x16xi32>
    %9 = arith.cmpi eq, %6, %8 : vector<16x16xi32>
    %10 = arith.extui %9 : vector<16x16xi1> to vector<16x16xi32>
    %11 = arith.sitofp %10 : vector<16x16xi32> to vector<16x16xf32>
    %12 = vector.extract_strided_slice %3 {offsets = [2, 0], sizes = [1, 16], strides = [1, 1]} : vector<4x16xi32> to vector<1x16xi32>
    %13 = vector.broadcast %12 : vector<1x16xi32> to vector<16x16xi32>
    %14 = arith.cmpi eq, %6, %13 : vector<16x16xi32>
    %15 = arith.extui %14 : vector<16x16xi1> to vector<16x16xi32>
    %16 = arith.sitofp %15 : vector<16x16xi32> to vector<16x16xf32>
    %17 = arith.addf %11, %16 : vector<16x16xf32>
    %cst = arith.constant dense<0.000000e+00> : vector<16x16xf32>
    %18 = tpu.matmul %1, %17, %cst {dimension_numbers = #tpu.dot_dimension_numbers<[1], [0], [0], [1], [0, 0, 1, 1], [], []>} : vector<16x16xf32>, vector<16x16xf32>, vector<16x16xf32> -> vector<16x16xf32>
    %19 = arith.subf %11, %16 : vector<16x16xf32>
    %cst_9 = arith.constant dense<0.000000e+00> : vector<16x16xf32>
    %20 = tpu.matmul %1, %19, %cst_9 {dimension_numbers = #tpu.dot_dimension_numbers<[1], [0], [0], [1], [0, 0, 1, 1], [], []>} : vector<16x16xf32>, vector<16x16xf32>, vector<16x16xf32> -> vector<16x16xf32>
    %21 = math.absf %20 : vector<16x16xf32>
    %22 = vector.extract_strided_slice %3 {offsets = [1, 0], sizes = [1, 16], strides = [1, 1]} : vector<4x16xi32> to vector<1x16xi32>
    %23 = vector.broadcast %22 : vector<1x16xi32> to vector<16x16xi32>
    %24 = arith.cmpi eq, %6, %23 : vector<16x16xi32>
    %25 = arith.extui %24 : vector<16x16xi1> to vector<16x16xi32>
    %26 = arith.sitofp %25 : vector<16x16xi32> to vector<16x16xf32>
    %27 = vector.extract_strided_slice %3 {offsets = [3, 0], sizes = [1, 16], strides = [1, 1]} : vector<4x16xi32> to vector<1x16xi32>
    %28 = vector.broadcast %27 : vector<1x16xi32> to vector<16x16xi32>
    %29 = arith.cmpi eq, %6, %28 : vector<16x16xi32>
    %30 = arith.extui %29 : vector<16x16xi1> to vector<16x16xi32>
    %31 = arith.sitofp %30 : vector<16x16xi32> to vector<16x16xf32>
    %32 = arith.addf %26, %31 : vector<16x16xf32>
    %cst_10 = arith.constant dense<0.000000e+00> : vector<16x16xf32>
    %33 = tpu.matmul %1, %32, %cst_10 {dimension_numbers = #tpu.dot_dimension_numbers<[1], [0], [0], [1], [0, 0, 1, 1], [], []>} : vector<16x16xf32>, vector<16x16xf32>, vector<16x16xf32> -> vector<16x16xf32>
    %34 = arith.subf %26, %31 : vector<16x16xf32>
    %cst_11 = arith.constant dense<0.000000e+00> : vector<16x16xf32>
    %35 = tpu.matmul %1, %34, %cst_11 {dimension_numbers = #tpu.dot_dimension_numbers<[1], [0], [0], [1], [0, 0, 1, 1], [], []>} : vector<16x16xf32>, vector<16x16xf32>, vector<16x16xf32> -> vector<16x16xf32>
    %36 = math.absf %35 : vector<16x16xf32>
    %37 = tpu.concatenate %1, %18, %33, %21, %36 in 0 : vector<16x16xf32>, vector<16x16xf32>, vector<16x16xf32>, vector<16x16xf32>, vector<16x16xf32> -> vector<80x16xf32>
    %38 = arith.truncf %37 : vector<80x16xf32> to vector<80x16xbf16>
    %cst_12 = arith.constant dense<0.000000e+00> : vector<8x16xf32>
    %39 = tpu.matmul %4, %38, %cst_12 {dimension_numbers = #tpu.dot_dimension_numbers<[1], [0], [0], [1], [0, 0, 1, 1], [], []>} : vector<8x80xbf16>, vector<80x16xbf16>, vector<8x16xf32> -> vector<8x16xf32>
    %40 = vector.broadcast %5 : vector<8x1xf32> to vector<8x16xf32>
    %41 = arith.addf %39, %40 : vector<8x16xf32>
    %c0_13 = arith.constant 0 : index
    %c0_14 = arith.constant 0 : index
    %c0_15 = arith.constant 0 : index
    %42 = vector.load %arg4[%c0_13, %c0_14, %c0_15] : memref<1x1x24xi32, #tpu.memory_space<vmem>>, vector<1x1x24xi32>
    %43 = vector.shape_cast %42 : vector<1x1x24xi32> to vector<1x24xi32>
    %c0_16 = arith.constant 0 : index
    %c0_17 = arith.constant 0 : index
    %c0_18 = arith.constant 0 : index
    %44 = vector.load %arg5[%c0_16, %c0_17, %c0_18] : memref<1x1x24xf32, #tpu.memory_space<vmem>>, vector<1x1x24xf32>
    %45 = vector.shape_cast %44 : vector<1x1x24xf32> to vector<1x24xf32>
    %46 = tpu.iota {dimensions = array<i32: 0>} : vector<16x24xi32>
    %47 = vector.broadcast %43 : vector<1x24xi32> to vector<16x24xi32>
    %48 = arith.cmpi eq, %46, %47 : vector<16x24xi32>
    %49 = arith.extui %48 : vector<16x24xi1> to vector<16x24xi32>
    %50 = arith.sitofp %49 : vector<16x24xi32> to vector<16x24xf32>
    %cst_19 = arith.constant dense<0.000000e+00> : vector<8x24xf32>
    %51 = tpu.matmul %41, %50, %cst_19 {dimension_numbers = #tpu.dot_dimension_numbers<[1], [0], [0], [1], [0, 0, 1, 1], [], []>} : vector<8x16xf32>, vector<16x24xf32>, vector<8x24xf32> -> vector<8x24xf32>
    %52 = vector.broadcast %45 : vector<1x24xf32> to vector<8x24xf32>
    %53 = arith.mulf %51, %52 : vector<8x24xf32>
    %c0_20 = arith.constant 0 : index
    %c0_21 = arith.constant 0 : index
    %c0_22 = arith.constant 0 : index
    %54 = vector.load %arg6[%c0_20, %c0_21, %c0_22] : memref<1x8x24xf32, #tpu.memory_space<vmem>>, vector<1x8x24xf32>
    %55 = vector.shape_cast %54 : vector<1x8x24xf32> to vector<8x24xf32>
    %56 = tpu.concatenate %53, %55 in 0 : vector<8x24xf32>, vector<8x24xf32> -> vector<16x24xf32>
    %c0_23 = arith.constant 0 : index
    %c0_24 = arith.constant 0 : index
    %c0_25 = arith.constant 0 : index
    %57 = vector.load %arg3[%c0_23, %c0_24, %c0_25] : memref<1x4x24xi32, #tpu.memory_space<vmem>>, vector<1x4x24xi32>
    %58 = vector.shape_cast %57 : vector<1x4x24xi32> to vector<4x24xi32>
    %c0_26 = arith.constant 0 : index
    %c0_27 = arith.constant 0 : index
    %59 = vector.load %arg9[%c0_26, %c0_27] : memref<8x80xbf16, #tpu.memory_space<vmem>>, vector<8x80xbf16>
    %c0_28 = arith.constant 0 : index
    %c0_29 = arith.constant 0 : index
    %60 = vector.load %arg10[%c0_28, %c0_29] : memref<8x1xf32, #tpu.memory_space<vmem>>, vector<8x1xf32>
    %61 = tpu.iota {dimensions = array<i32: 0>} : vector<24x24xi32>
    %62 = vector.extract_strided_slice %58 {offsets = [0, 0], sizes = [1, 24], strides = [1, 1]} : vector<4x24xi32> to vector<1x24xi32>
    %63 = vector.broadcast %62 : vector<1x24xi32> to vector<24x24xi32>
    %64 = arith.cmpi eq, %61, %63 : vector<24x24xi32>
    %65 = arith.extui %64 : vector<24x24xi1> to vector<24x24xi32>
    %66 = arith.sitofp %65 : vector<24x24xi32> to vector<24x24xf32>
    %67 = vector.extract_strided_slice %58 {offsets = [2, 0], sizes = [1, 24], strides = [1, 1]} : vector<4x24xi32> to vector<1x24xi32>
    %68 = vector.broadcast %67 : vector<1x24xi32> to vector<24x24xi32>
    %69 = arith.cmpi eq, %61, %68 : vector<24x24xi32>
    %70 = arith.extui %69 : vector<24x24xi1> to vector<24x24xi32>
    %71 = arith.sitofp %70 : vector<24x24xi32> to vector<24x24xf32>
    %72 = arith.addf %66, %71 : vector<24x24xf32>
    %cst_30 = arith.constant dense<0.000000e+00> : vector<16x24xf32>
    %73 = tpu.matmul %56, %72, %cst_30 {dimension_numbers = #tpu.dot_dimension_numbers<[1], [0], [0], [1], [0, 0, 1, 1], [], []>} : vector<16x24xf32>, vector<24x24xf32>, vector<16x24xf32> -> vector<16x24xf32>
    %74 = arith.subf %66, %71 : vector<24x24xf32>
    %cst_31 = arith.constant dense<0.000000e+00> : vector<16x24xf32>
    %75 = tpu.matmul %56, %74, %cst_31 {dimension_numbers = #tpu.dot_dimension_numbers<[1], [0], [0], [1], [0, 0, 1, 1], [], []>} : vector<16x24xf32>, vector<24x24xf32>, vector<16x24xf32> -> vector<16x24xf32>
    %76 = math.absf %75 : vector<16x24xf32>
    %77 = vector.extract_strided_slice %58 {offsets = [1, 0], sizes = [1, 24], strides = [1, 1]} : vector<4x24xi32> to vector<1x24xi32>
    %78 = vector.broadcast %77 : vector<1x24xi32> to vector<24x24xi32>
    %79 = arith.cmpi eq, %61, %78 : vector<24x24xi32>
    %80 = arith.extui %79 : vector<24x24xi1> to vector<24x24xi32>
    %81 = arith.sitofp %80 : vector<24x24xi32> to vector<24x24xf32>
    %82 = vector.extract_strided_slice %58 {offsets = [3, 0], sizes = [1, 24], strides = [1, 1]} : vector<4x24xi32> to vector<1x24xi32>
    %83 = vector.broadcast %82 : vector<1x24xi32> to vector<24x24xi32>
    %84 = arith.cmpi eq, %61, %83 : vector<24x24xi32>
    %85 = arith.extui %84 : vector<24x24xi1> to vector<24x24xi32>
    %86 = arith.sitofp %85 : vector<24x24xi32> to vector<24x24xf32>
    %87 = arith.addf %81, %86 : vector<24x24xf32>
    %cst_32 = arith.constant dense<0.000000e+00> : vector<16x24xf32>
    %88 = tpu.matmul %56, %87, %cst_32 {dimension_numbers = #tpu.dot_dimension_numbers<[1], [0], [0], [1], [0, 0, 1, 1], [], []>} : vector<16x24xf32>, vector<24x24xf32>, vector<16x24xf32> -> vector<16x24xf32>
    %89 = arith.subf %81, %86 : vector<24x24xf32>
    %cst_33 = arith.constant dense<0.000000e+00> : vector<16x24xf32>
    %90 = tpu.matmul %56, %89, %cst_33 {dimension_numbers = #tpu.dot_dimension_numbers<[1], [0], [0], [1], [0, 0, 1, 1], [], []>} : vector<16x24xf32>, vector<24x24xf32>, vector<16x24xf32> -> vector<16x24xf32>
    %91 = math.absf %90 : vector<16x24xf32>
    %92 = tpu.concatenate %56, %73, %88, %76, %91 in 0 : vector<16x24xf32>, vector<16x24xf32>, vector<16x24xf32>, vector<16x24xf32>, vector<16x24xf32> -> vector<80x24xf32>
    %93 = arith.truncf %92 : vector<80x24xf32> to vector<80x24xbf16>
    %cst_34 = arith.constant dense<0.000000e+00> : vector<8x24xf32>
    %94 = tpu.matmul %59, %93, %cst_34 {dimension_numbers = #tpu.dot_dimension_numbers<[1], [0], [0], [1], [0, 0, 1, 1], [], []>} : vector<8x80xbf16>, vector<80x24xbf16>, vector<8x24xf32> -> vector<8x24xf32>
    %95 = vector.broadcast %60 : vector<8x1xf32> to vector<8x24xf32>
    %96 = arith.addf %94, %95 : vector<8x24xf32>
    %cst_35 = arith.constant dense<0.000000e+00> : vector<8xf32>
    %97 = vector.multi_reduction <add>, %96, %cst_35 [1] : vector<8x24xf32> to vector<8xf32>
    %98 = vector.shape_cast %97 : vector<8xf32> to vector<8x1xf32>
    %cst_36 = arith.constant 2.400000e+01 : f32
    %99 = vector.broadcast %cst_36 : f32 to vector<8x1xf32>
    %100 = arith.divf %98, %99 : vector<8x1xf32>
    %101 = arith.mulf %96, %96 : vector<8x24xf32>
    %cst_37 = arith.constant dense<0.000000e+00> : vector<8xf32>
    %102 = vector.multi_reduction <add>, %101, %cst_37 [1] : vector<8x24xf32> to vector<8xf32>
    %103 = vector.shape_cast %102 : vector<8xf32> to vector<8x1xf32>
    %cst_38 = arith.constant 2.400000e+01 : f32
    %104 = vector.broadcast %cst_38 : f32 to vector<8x1xf32>
    %105 = arith.divf %103, %104 : vector<8x1xf32>
    %106 = arith.mulf %100, %100 : vector<8x1xf32>
    %107 = arith.subf %105, %106 : vector<8x1xf32>
    %cst_39 = arith.constant 0.000000e+00 : f32
    %108 = vector.broadcast %cst_39 : f32 to vector<8x1xf32>
    %109 = arith.maximumf %107, %108 : vector<8x1xf32>
    %110 = vector.broadcast %100 : vector<8x1xf32> to vector<8x24xf32>
    %111 = arith.subf %96, %110 : vector<8x24xf32>
    %cst_40 = arith.constant 9.99999974E-6 : f32
    %112 = vector.broadcast %cst_40 : f32 to vector<8x1xf32>
    %113 = arith.addf %109, %112 : vector<8x1xf32>
    %114 = math.rsqrt %113 : vector<8x1xf32>
    %115 = vector.broadcast %114 : vector<8x1xf32> to vector<8x24xf32>
    %116 = arith.mulf %111, %115 : vector<8x24xf32>
    %cst_41 = arith.constant 0.000000e+00 : f32
    %117 = vector.broadcast %cst_41 : f32 to vector<8x24xf32>
    %118 = arith.maximumf %116, %117 : vector<8x24xf32>
    %c0_42 = arith.constant 0 : index
    %c0_43 = arith.constant 0 : index
    %c0_44 = arith.constant 0 : index
    %119 = vector.load %arg11[%c0_42, %c0_43, %c0_44] : memref<1x8x40xbf16, #tpu.memory_space<vmem>>, vector<1x8x40xbf16>
    %120 = vector.shape_cast %119 : vector<1x8x40xbf16> to vector<8x40xbf16>
    %c0_45 = arith.constant 0 : index
    %c0_46 = arith.constant 0 : index
    %c0_47 = arith.constant 0 : index
    %121 = vector.load %arg12[%c0_45, %c0_46, %c0_47] : memref<1x8x1xf32, #tpu.memory_space<vmem>>, vector<1x8x1xf32>
    %122 = vector.shape_cast %121 : vector<1x8x1xf32> to vector<8x1xf32>
    %123 = tpu.iota {dimensions = array<i32: 0>} : vector<24x24xi32>
    %124 = vector.extract_strided_slice %58 {offsets = [0, 0], sizes = [1, 24], strides = [1, 1]} : vector<4x24xi32> to vector<1x24xi32>
    %125 = vector.broadcast %124 : vector<1x24xi32> to vector<24x24xi32>
    %126 = arith.cmpi eq, %123, %125 : vector<24x24xi32>
    %127 = arith.extui %126 : vector<24x24xi1> to vector<24x24xi32>
    %128 = arith.sitofp %127 : vector<24x24xi32> to vector<24x24xf32>
    %129 = vector.extract_strided_slice %58 {offsets = [2, 0], sizes = [1, 24], strides = [1, 1]} : vector<4x24xi32> to vector<1x24xi32>
    %130 = vector.broadcast %129 : vector<1x24xi32> to vector<24x24xi32>
    %131 = arith.cmpi eq, %123, %130 : vector<24x24xi32>
    %132 = arith.extui %131 : vector<24x24xi1> to vector<24x24xi32>
    %133 = arith.sitofp %132 : vector<24x24xi32> to vector<24x24xf32>
    %134 = arith.addf %128, %133 : vector<24x24xf32>
    %cst_48 = arith.constant dense<0.000000e+00> : vector<8x24xf32>
    %135 = tpu.matmul %118, %134, %cst_48 {dimension_numbers = #tpu.dot_dimension_numbers<[1], [0], [0], [1], [0, 0, 1, 1], [], []>} : vector<8x24xf32>, vector<24x24xf32>, vector<8x24xf32> -> vector<8x24xf32>
    %136 = arith.subf %128, %133 : vector<24x24xf32>
    %cst_49 = arith.constant dense<0.000000e+00> : vector<8x24xf32>
    %137 = tpu.matmul %118, %136, %cst_49 {dimension_numbers = #tpu.dot_dimension_numbers<[1], [0], [0], [1], [0, 0, 1, 1], [], []>} : vector<8x24xf32>, vector<24x24xf32>, vector<8x24xf32> -> vector<8x24xf32>
    %138 = math.absf %137 : vector<8x24xf32>
    %139 = vector.extract_strided_slice %58 {offsets = [1, 0], sizes = [1, 24], strides = [1, 1]} : vector<4x24xi32> to vector<1x24xi32>
    %140 = vector.broadcast %139 : vector<1x24xi32> to vector<24x24xi32>
    %141 = arith.cmpi eq, %123, %140 : vector<24x24xi32>
    %142 = arith.extui %141 : vector<24x24xi1> to vector<24x24xi32>
    %143 = arith.sitofp %142 : vector<24x24xi32> to vector<24x24xf32>
    %144 = vector.extract_strided_slice %58 {offsets = [3, 0], sizes = [1, 24], strides = [1, 1]} : vector<4x24xi32> to vector<1x24xi32>
    %145 = vector.broadcast %144 : vector<1x24xi32> to vector<24x24xi32>
    %146 = arith.cmpi eq, %123, %145 : vector<24x24xi32>
    %147 = arith.extui %146 : vector<24x24xi1> to vector<24x24xi32>
    %148 = arith.sitofp %147 : vector<24x24xi32> to vector<24x24xf32>
    %149 = arith.addf %143, %148 : vector<24x24xf32>
    %cst_50 = arith.constant dense<0.000000e+00> : vector<8x24xf32>
    %150 = tpu.matmul %118, %149, %cst_50 {dimension_numbers = #tpu.dot_dimension_numbers<[1], [0], [0], [1], [0, 0, 1, 1], [], []>} : vector<8x24xf32>, vector<24x24xf32>, vector<8x24xf32> -> vector<8x24xf32>
    %151 = arith.subf %143, %148 : vector<24x24xf32>
    %cst_51 = arith.constant dense<0.000000e+00> : vector<8x24xf32>
    %152 = tpu.matmul %118, %151, %cst_51 {dimension_numbers = #tpu.dot_dimension_numbers<[1], [0], [0], [1], [0, 0, 1, 1], [], []>} : vector<8x24xf32>, vector<24x24xf32>, vector<8x24xf32> -> vector<8x24xf32>
    %153 = math.absf %152 : vector<8x24xf32>
    %154 = tpu.concatenate %118, %135, %150, %138, %153 in 0 : vector<8x24xf32>, vector<8x24xf32>, vector<8x24xf32>, vector<8x24xf32>, vector<8x24xf32> -> vector<40x24xf32>
    %155 = arith.truncf %154 : vector<40x24xf32> to vector<40x24xbf16>
    %cst_52 = arith.constant dense<0.000000e+00> : vector<8x24xf32>
    %156 = tpu.matmul %120, %155, %cst_52 {dimension_numbers = #tpu.dot_dimension_numbers<[1], [0], [0], [1], [0, 0, 1, 1], [], []>} : vector<8x40xbf16>, vector<40x24xbf16>, vector<8x24xf32> -> vector<8x24xf32>
    %157 = vector.broadcast %122 : vector<8x1xf32> to vector<8x24xf32>
    %158 = arith.addf %156, %157 : vector<8x24xf32>
    %cst_53 = arith.constant dense<0.000000e+00> : vector<8xf32>
    %159 = vector.multi_reduction <add>, %158, %cst_53 [1] : vector<8x24xf32> to vector<8xf32>
    %160 = vector.shape_cast %159 : vector<8xf32> to vector<8x1xf32>
    %cst_54 = arith.constant 2.400000e+01 : f32
    %161 = vector.broadcast %cst_54 : f32 to vector<8x1xf32>
    %162 = arith.divf %160, %161 : vector<8x1xf32>
    %163 = arith.mulf %158, %158 : vector<8x24xf32>
    %cst_55 = arith.constant dense<0.000000e+00> : vector<8xf32>
    %164 = vector.multi_reduction <add>, %163, %cst_55 [1] : vector<8x24xf32> to vector<8xf32>
    %165 = vector.shape_cast %164 : vector<8xf32> to vector<8x1xf32>
    %cst_56 = arith.constant 2.400000e+01 : f32
    %166 = vector.broadcast %cst_56 : f32 to vector<8x1xf32>
    %167 = arith.divf %165, %166 : vector<8x1xf32>
    %168 = arith.mulf %162, %162 : vector<8x1xf32>
    %169 = arith.subf %167, %168 : vector<8x1xf32>
    %cst_57 = arith.constant 0.000000e+00 : f32
    %170 = vector.broadcast %cst_57 : f32 to vector<8x1xf32>
    %171 = arith.maximumf %169, %170 : vector<8x1xf32>
    %172 = vector.broadcast %162 : vector<8x1xf32> to vector<8x24xf32>
    %173 = arith.subf %158, %172 : vector<8x24xf32>
    %cst_58 = arith.constant 9.99999974E-6 : f32
    %174 = vector.broadcast %cst_58 : f32 to vector<8x1xf32>
    %175 = arith.addf %171, %174 : vector<8x1xf32>
    %176 = math.rsqrt %175 : vector<8x1xf32>
    %177 = vector.broadcast %176 : vector<8x1xf32> to vector<8x24xf32>
    %178 = arith.mulf %173, %177 : vector<8x24xf32>
    %179 = arith.addf %178, %118 : vector<8x24xf32>
    %cst_59 = arith.constant 0.000000e+00 : f32
    %180 = vector.broadcast %cst_59 : f32 to vector<8x24xf32>
    %181 = arith.maximumf %179, %180 : vector<8x24xf32>
    %c0_60 = arith.constant 0 : index
    %c0_61 = arith.constant 0 : index
    %c0_62 = arith.constant 0 : index
    %182 = vector.load %arg13[%c0_60, %c0_61, %c0_62] : memref<1x8x24xf32, #tpu.memory_space<vmem>>, vector<1x8x24xf32>
    %183 = vector.shape_cast %182 : vector<1x8x24xf32> to vector<8x24xf32>
    %184 = vector.shape_cast %181 : vector<8x24xf32> to vector<1x8x24xf32>
    tpu.vector_store %arg13[%c0_60, %c0_61, %c0_62], %184 {strides = array<i32>} : memref<1x8x24xf32, #tpu.memory_space<vmem>>, vector<1x8x24xf32>,
    return
  }
  func.func @transform_0(%arg0: i32) -> (i32, i32, i32) {
    %c0_i32 = arith.constant 0 : i32
    %c0_i32_0 = arith.constant 0 : i32
    %c0_i32_1 = arith.constant 0 : i32
    return %arg0, %c0_i32, %c0_i32_0 : i32, i32, i32
  }
  func.func @transform_1(%arg0: i32) -> (i32, i32, i32) {
    %c0_i32 = arith.constant 0 : i32
    %c0_i32_0 = arith.constant 0 : i32
    %c0_i32_1 = arith.constant 0 : i32
    return %arg0, %c0_i32, %c0_i32_0 : i32, i32, i32
  }
  func.func @transform_2(%arg0: i32) -> (i32, i32, i32) {
    %c0_i32 = arith.constant 0 : i32
    %c0_i32_0 = arith.constant 0 : i32
    %c0_i32_1 = arith.constant 0 : i32
    return %arg0, %c0_i32, %c0_i32_0 : i32, i32, i32
  }
  func.func @transform_3(%arg0: i32) -> (i32, i32, i32) {
    %c0_i32 = arith.constant 0 : i32
    %c0_i32_0 = arith.constant 0 : i32
    %c0_i32_1 = arith.constant 0 : i32
    return %arg0, %c0_i32, %c0_i32_0 : i32, i32, i32
  }
  func.func @transform_4(%arg0: i32) -> (i32, i32, i32) {
    %c0_i32 = arith.constant 0 : i32
    %c0_i32_0 = arith.constant 0 : i32
    %c0_i32_1 = arith.constant 0 : i32
    return %arg0, %c0_i32, %c0_i32_0 : i32, i32, i32
  }
  func.func @transform_5(%arg0: i32) -> (i32, i32, i32) {
    %c0_i32 = arith.constant 0 : i32
    %c0_i32_0 = arith.constant 0 : i32
    %c0_i32_1 = arith.constant 0 : i32
    return %arg0, %c0_i32, %c0_i32_0 : i32, i32, i32
  }
  func.func @transform_6(%arg0: i32) -> (i32, i32) {
    %c0_i32 = arith.constant 0 : i32
    %c0_i32_0 = arith.constant 0 : i32
    %c0_i32_1 = arith.constant 0 : i32
    return %c0_i32, %c0_i32_0 : i32, i32
  }
  func.func @transform_7(%arg0: i32) -> (i32, i32) {
    %c0_i32 = arith.constant 0 : i32
    %c0_i32_0 = arith.constant 0 : i32
    %c0_i32_1 = arith.constant 0 : i32
    return %c0_i32, %c0_i32_0 : i32, i32
  }
  func.func @transform_8(%arg0: i32) -> (i32, i32) {
    %c0_i32 = arith.constant 0 : i32
    %c0_i32_0 = arith.constant 0 : i32
    %c0_i32_1 = arith.constant 0 : i32
    return %c0_i32, %c0_i32_0 : i32, i32
  }
  func.func @transform_9(%arg0: i32) -> (i32, i32) {
    %c0_i32 = arith.constant 0 : i32
    %c0_i32_0 = arith.constant 0 : i32
    %c0_i32_1 = arith.constant 0 : i32
    return %c0_i32, %c0_i32_0 : i32, i32
  }
  func.func @transform_10(%arg0: i32) -> (i32, i32, i32) {
    %c0_i32 = arith.constant 0 : i32
    %c0_i32_0 = arith.constant 0 : i32
    %c0_i32_1 = arith.constant 0 : i32
    %c0_i32_2 = arith.constant 0 : i32
    return %c0_i32, %c0_i32_0, %c0_i32_1 : i32, i32, i32
  }
  func.func @transform_11(%arg0: i32) -> (i32, i32, i32) {
    %c0_i32 = arith.constant 0 : i32
    %c0_i32_0 = arith.constant 0 : i32
    %c0_i32_1 = arith.constant 0 : i32
    %c0_i32_2 = arith.constant 0 : i32
    return %c0_i32, %c0_i32_0, %c0_i32_1 : i32, i32, i32
  }
  func.func @transform_12(%arg0: i32) -> (i32, i32, i32) {
    %c0_i32 = arith.constant 0 : i32
    %c0_i32_0 = arith.constant 0 : i32
    %c0_i32_1 = arith.constant 0 : i32
    return %arg0, %c0_i32, %c0_i32_0 : i32, i32, i32
  }
}

</mosaic_0001>

<bundles_post_ra>
// kernel: tpu_custom_call.1
= control target key start
LH: loop header
LB: loop body
LE: loop exit
PB: predicated region body
PF: predicated region fallthrough
CT: control target
= control target key end

     0   :  { %s3106_s0 = inlined_call_operand.hbm [shape: f32[2,16,16], index: 0, kind: input, shape index: {}]   ;;  %s3107_s1 = inlined_call_operand.vmem [shape: s32[2,4,16], index: 1, kind: input, shape index: {}]   ;;  %s3108_s2 = inlined_call_operand.vmem [shape: s32[2,4,24], index: 2, kind: input, shape index: {}]   ;;  %s3109_s3 = inlined_call_operand.hbm [shape: s32[2,1,24], index: 3, kind: input, shape index: {}]   ;;  %s3110_s4 = inlined_call_operand.hbm [shape: f32[2,1,24], index: 4, kind: input, shape index: {}]   ;;  %s3111_s5 = inlined_call_operand.vmem [shape: f32[2,8,24], index: 5, kind: input, shape index: {}]   ;;  %s3112_s6 = inlined_call_operand.vmem [shape: bf16[8,80], index: 6, kind: input, shape index: {}]   ;;  %s3113_s7 = inlined_call_operand.vmem [shape: f32[8,1], index: 7, kind: input, shape index: {}]   ;;  %s3114_s8 = inlined_call_operand.vmem [shape: bf16[8,80], index: 8, kind: input, shape index: {}]   ;;  %s3115_s9 = inlined_call_operand.vmem [shape: f32[8,1], index: 9, kind: input, shape index: {}]   ;;  %s3116_s10 = inlined_call_operand.vmem [shape: bf16[1,8,40], index: 10, kind: input, shape index: {}]   ;;  %s3117_s11 = inlined_call_operand.vmem [shape: f32[1,8,1], index: 11, kind: input, shape index: {}]   ;;  %s3118_s12 = inlined_call_operand.hbm [shape: f32[2,8,24], index: 12, kind: output, shape index: {}]  }
   0x1   :  { %3132 = sst [smem:[#allocation19_spill]] %s3106_s0 }
   0x2   :  { %3133 = sst [smem:[#allocation20_spill]] %s3109_s3 }
   0x3   :  { %3134 = sst [smem:[#allocation21_spill]] %s3116_s10 }
   0x4   :  { %3135 = sst [smem:[#allocation22_spill]] %s3118_s12 }
   0x5   :  { %17 = vsyncpa [#allocation3], 0 }
   0x6   :  { %19 = vsyncpa [#allocation3 + $0x1], 0 }
   0x7   :  { %20 = vsyncpa [#allocation6], 0 }
   0x8   :  { %22 = vsyncpa [#allocation6 + $0x1], 0 }
   0x9   :  { %23 = vsyncpa [#allocation4], 0 }
   0xa   :  { %25 = vsyncpa [#allocation4 + $0x1], 0  ;;  %s2670_s21 = smov 0   ;;  %s2672_s22 = smov 0  }
   0xb   :  { %s2674_s23 = smov 0   ;;  %s2676_s24 = smov 0  }
   0xc LB: > { %3136 = sst [smem:[#allocation12_spill]] %s2580_s21  ;;  %s2691_s25 = sadd.s32 4294967295, %s2592_s24   ;;  %s2592_s24 = sphi %s2676_s24, %s3164_s24   ;;  %s2588_s23 = sphi %s2674_s23, %s3166_s23   ;;  %s2584_s22 = sphi %s2672_s22, %s3168_s22   ;;  %s2580_s21 = sphi %s2670_s21, %s3167_s21  }
   0xd   : > { %3137 = sst [smem:[#allocation13_spill]] %s2588_s23  ;;  %s2032_s26 = sadd.s32 4294967294, %s2592_s24  }
   0xe   : > { %3138 = sst [smem:[#allocation14_spill]] %s2592_s24  ;;  %s2695_s27 = sadd.s32 1, %s2592_s24  }
   0xf   : > { %3139 = sst [smem:[#allocation15_spill]] %s2695_s27  ;;  %s38_s28 = sadd.s32 1, %s2588_s23 }
  0x10   : > { %s35_s29 = ssub.s32 %s2592_s24, %s2695_s27  ;;  %p45_p0 = scmp.ne.s32.totalorder %s2588_s23, %s2584_s22 }
  0x11   : > { %p36_p1 = scmp.eq.s32.totalorder %s35_s29, 0  ;;  %p46_p2 = scmp.eq.s32.totalorder %s2592_s24, 0 }
  0x12   : > { %p51_p3 = scmp.ne.s32.totalorder %s2584_s22, %s2580_s21  ;;  %p52_p4 = scmp.eq.s32.totalorder %s2691_s25, 0 }
  0x13   : > { %s2707_s30 = scalar_select %p36_p1, %s2588_s23, %s38_s28  }
  0x14   : > { %p47_p5 = por %p46_p2, %p45_p0  ;;  %p2709_p6 = por %p52_p4, %p51_p3 }
  0x15   : > { %3140 = sst [smem:[#allocation16_spill]] %s2707_s30  ;;  %p331_p7 = scmp.eq.s32.totalorder %s2691_s25, 1 }
  0x16   : > { %s3141_s13 = scalar_select %p2709_p6, 1, 0 }
  0x17   : > { %p337_p8 = scmp.eq.s32.totalorder %s2032_s26, 1  ;;  %p2386_p10 = scmp.lt.s32.totalorder %s2592_s24, 2 }
  0x18   : > { %p2716_p11 = por %p331_p7, %p45_p0  ;;  %s2725_s16 = sand.u32 1, %s2588_s23  }
  0x19   : > { %p2720_p12 = por %p337_p8, %p51_p3  ;;  %p2727_p13 = pnand %p2386_p10, %p47_p5 }
  0x1a   : > { %s3142_s14 = scalar_select %p2716_p11, 1, 0 }
  0x1b   : > { %s3144_s15 = scalar_select %p2720_p12, 1, 0 }
  0x1c   : > { %3143 = sst [smem:[#allocation17_spill]] %s3142_s14  ;;  %s410_s18 = sand.u32 1, %s2592_s24  }
  0x1d   : > { %3145 = sst [smem:[#allocation18_spill]] %s3144_s15  ;;  %s3123_s19 = sshll.u32 %s2592_s24, 4 }
  0x1e   : > { %s3146_s17 = scalar_select %p2727_p13, 1, 0 }
  0x1f   : > { %s413_s20 = scalar_lea.vmem [#allocation5], %s2725_s16  ;;  %s3147_s3 = sld [smem:[#allocation20_spill]] }
  0x20   : > { %s420_s26 = sshll.u32 %s413_s20, 4  ;;  %s2743_s23 = scalar_lea.sflag [#allocation6], %s410_s18  ;;  %s2741_s26 = int_to_ptr.vmem [resolvable:$true] %s420_s26 }
  0x21   : > { %p2749_p1 = pneg %p2727_p13 }
  0x25   : > { %s2739_s30 = scalar_lea.hbm %s3147_s3, %s3123_s19  ;;  %s2437_s29 = scalar_lea.hbm %s3147_s3, 32 }
  0x26   : > { %s2432_s27 = scalar_lea.hbm %s2739_s30, 16  ;;  %p2438_p4 = scmp.lt.u32.totalorder %s2739_s30, %s3147_s3 }
  0x27   : > { %p2433_p0 = scmp.ne.s32.totalorder %s2739_s30, %s2432_s27  ;;  %p2439_p5 = scmp.lt.u32.totalorder %s2437_s29, %s2432_s27 }
  0x28   : > { %p2441_p8 = scmp.lt.u32.totalorder %s2432_s27, %s2739_s30 }
  0x29   : > { %p2435_p2 = pnand %p2749_p1, %p2433_p0  ;;  %p2440_p7 = por %p2439_p5, %p2438_p4 }
  0x2b   : > { %p2436_p3 = pneg %p2435_p2  ;;  %p2442_p10 = por %p2441_p8, %p2440_p7 }
  0x2d   : > { %p2443_p9 = pnand %p2442_p10, %p2436_p3 }
  0x2f   : > { %2446 = shalt.err (!%p2443_p9)
}
  0x30   : > { %s2447_s18 = scalar_lea.vmem %s2741_s26, 16  ;;  %s2594_s20 = smov [#allocation5]  }
  0x31   : > { %p2448_p0 = scmp.ne.s32.totalorder %s2741_s26, %s2447_s18  ;;  %s2452_s28 = sshll.u32 %s2594_s20, 4  ;;  %s2453_s28 = int_to_ptr.vmem [resolvable:$false] %s2452_s28 }
  0x32   : > { %s2454_s21 = scalar_lea.vmem %s2453_s28, 32  ;;  %p2455_p11 = scmp.lt.s32.totalorder %s2741_s26, %s2453_s28 }
  0x33   : > { %p2450_p2 = pnand %p2448_p0, %p2749_p1  ;;  %p2456_p6 = scmp.lt.s32.totalorder %s2454_s21, %s2447_s18 }
  0x35   : > { %p2451_p12 = pneg %p2450_p2  ;;  %p2457_p4 = por %p2456_p6, %p2455_p11 }
  0x37   : > { %p2458_p5 = pnand %p2457_p4, %p2451_p12 }
  0x39   : > { %2461 = shalt.err (!%p2458_p5)
}
  0x3a   : > { %2378 = dma.hbm_to_vmem [thread:$0]  (!%p2727_p13), %s2739_s30, 16, %s2741_s26, %s2743_s23  }
  0x3b   : > { %s3149_s27 = sshll.u32 %s2592_s24, 4  ;;  %p2040_p6 = scmp.ge.s32.totalorder %s2592_s24, 1 }
  0x3c   : > { %s2778_s18 = scalar_lea.hbm %s3110_s4, %s3149_s27  ;;  %p449_p9 = scmp.lt.s32.totalorder %s2592_s24, 3 }
  0x3d   : > { %s2035_s20 = sshll.u32 %s2725_s16, 4  ;;  %s2100_s28 = sshll.u32 %s2592_s24, 8 }
  0x3e   : > { %p2784_p11 = pnand %p2040_p6, %p449_p9  ;;  %s3151_s0 = sld [smem:[#allocation19_spill]] }
  0x3f   : > { %s379_s30 = scalar_lea.vmem [#allocation2], %s2035_s20  ;;  %s376_s27 = scalar_lea.sflag [#allocation3], %s2725_s16 }
  0x40   : > { %s3150_s21 = scalar_select %p2784_p11, 1, 0 }
  0x41   : > { %s386_s26 = sshll.u32 %s379_s30, 4  ;;  %s2793_s26 = int_to_ptr.vmem [resolvable:$true] %s386_s26 }
  0x44   : > { %s2791_s14 = scalar_lea.hbm %s3151_s0, %s2100_s28  ;;  %s2467_s3 = scalar_lea.hbm %s3151_s0, 512 }
  0x45   : > { %s2462_s19 = scalar_lea.hbm %s2791_s14, 256  ;;  %p2468_p8 = scmp.lt.u32.totalorder %s2791_s14, %s3151_s0 }
  0x46   : > { %p2463_p12 = scmp.ne.s32.totalorder %s2791_s14, %s2462_s19  ;;  %p2469_p10 = scmp.lt.u32.totalorder %s2467_s3, %s2462_s19 }
  0x47   : > { %p2471_p2 = scmp.lt.u32.totalorder %s2462_s19, %s2791_s14 }
  0x48   : > { %p2465_p3 = pnand %p2463_p12, %p2749_p1  ;;  %p2470_p0 = por %p2469_p10, %p2468_p8 }
  0x4a   : > { %p2466_p7 = pneg %p2465_p3  ;;  %p2472_p4 = por %p2471_p2, %p2470_p0 }
  0x4c   : > { %p2473_p5 = pnand %p2472_p4, %p2466_p7 }
  0x4e   : > { %2476 = shalt.err (!%p2473_p5)
}
  0x4f   : > { %s2477_s20 = scalar_lea.vmem %s2793_s26, 256  ;;  %s2595_s24 = smov [#allocation2]  }
  0x50   : > { %p2478_p6 = scmp.ne.s32.totalorder %s2793_s26, %s2477_s20  ;;  %s2482_s30 = sshll.u32 %s2595_s24, 4  ;;  %s2483_s30 = int_to_ptr.vmem [resolvable:$false] %s2482_s30 }
  0x51   : > { %s2484_s29 = scalar_lea.vmem %s2483_s30, 512  ;;  %p2485_p3 = scmp.lt.s32.totalorder %s2793_s26, %s2483_s30 }
  0x52   : > { %p2480_p9 = pnand %p2478_p6, %p2749_p1  ;;  %p2486_p11 = scmp.lt.s32.totalorder %s2484_s29, %s2477_s20 }
  0x54   : > { %p2481_p12 = pneg %p2480_p9  ;;  %p2487_p8 = por %p2486_p11, %p2485_p3 }
  0x56   : > { %p2488_p10 = pnand %p2487_p8, %p2481_p12 }
  0x58   : > { %2491 = shalt.err (!%p2488_p10)
}
  0x59   : > { %s2596_s19 = smov 128   ;;  %s2597_s3 = smov 8  }
  0x5a   : > { %2375 = dma.hbm_to_vmem [thread:$0]  (!%p2727_p13), %s2791_s14, 256, %s2793_s26, %s376_s27, %s2596_s19, %s2596_s19, %s2597_s3  }
  0x5b   : > { %s430_s12 = scalar_lea.vmem [#allocation7], %s2725_s16  ;;  %s2492_s20 = scalar_lea.hbm %s2778_s18, 16 }
  0x5c   : > { %s437_s28 = sshll.u32 %s430_s12, 4  ;;  %p2493_p11 = scmp.ne.s32.totalorder %s2778_s18, %s2492_s20  ;;  %s438_s28 = int_to_ptr.vmem [resolvable:$true] %s437_s28 }
  0x5d   : > { %s2497_s29 = scalar_lea.hbm %s3110_s4, 32  ;;  %p2498_p2 = scmp.lt.u32.totalorder %s2778_s18, %s3110_s4 }
  0x5e   : > { %p2495_p7 = pnand %p2493_p11, %p2749_p1  ;;  %p2499_p4 = scmp.lt.u32.totalorder %s2497_s29, %s2492_s20 }
  0x5f   : > { %p2501_p6 = scmp.lt.u32.totalorder %s2492_s20, %s2778_s18 }
  0x60   : > { %p2496_p0 = pneg %p2495_p7  ;;  %p2500_p5 = por %p2499_p4, %p2498_p2 }
  0x62   : > { %p2502_p9 = por %p2501_p6, %p2500_p5 }
  0x64   : > { %p2503_p12 = pnand %p2502_p9, %p2496_p0 }
  0x66   : > { %2506 = shalt.err (!%p2503_p12)
}
  0x67   : > { %s2507_s14 = scalar_lea.vmem %s438_s28, 16  ;;  %s2598_s16 = smov [#allocation7]  }
  0x68   : > { %p2508_p3 = scmp.ne.s32.totalorder %s438_s28, %s2507_s14  ;;  %s2512_s26 = sshll.u32 %s2598_s16, 4  ;;  %s2513_s26 = int_to_ptr.vmem [resolvable:$false] %s2512_s26 }
  0x69   : > { %s2514_s27 = scalar_lea.vmem %s2513_s26, 32  ;;  %p2515_p11 = scmp.lt.s32.totalorder %s438_s28, %s2513_s26 }
  0x6a   : > { %p2510_p8 = pnand %p2508_p3, %p2749_p1  ;;  %p2516_p7 = scmp.lt.s32.totalorder %s2514_s27, %s2507_s14 }
  0x6c   : > { %p2511_p10 = pneg %p2510_p8  ;;  %p2517_p13 = por %p2516_p7, %p2515_p11 }
  0x6e   : > { %p2518_p2 = pnand %p2517_p13, %p2511_p10 }
  0x70   : > { %2521 = shalt.err (!%p2518_p2)
}
  0x71   : > { %p3152_p4 = scmp.ne.s32.totalorder %s3146_s17, 0  ;;  %p3153_p0 = scmp.ne.s32.totalorder %s3150_s21, 0 }
  0x72   : > { %s2841_s0 = sand.u32 (!%p3153_p0), 1, %s2584_s22   ;;  %p3154_p13 = scmp.ne.s32.totalorder (!%p3153_p0), %s3141_s13, 0 }
  0x73   : > { %2381 = dma.hbm_to_vmem [thread:$0]  (!%p3152_p4), %s2778_s18, 16, %s438_s28, %s2743_s23  }
  0x74   : > { %453 = sbr.rel (%p3153_p0) target bundleno = 2058 (0x80a), region = 68  ;;  %s2041_s10 = sshll.u32 (!%p3153_p0), %s2841_s0, 4 }
  0x75   : > { %s456_s15 = scalar_lea.sflag (!%p3153_p0), [#allocation3], %s2841_s0  ;;  %s2845_s19 = scalar_lea.vmem (!%p3153_p0), [#allocation2], %s2041_s10 }
  0x7b   : > { %2567 = dma.done.wait (%p3154_p13), %s456_s15, 256  }
  0x7c   : > { %2569 = vsyncadd (%p3154_p13), %s456_s15, 4294967040  ;;  %s464_s23 = sand.u32 1, %s2691_s25   ;;  %s467_s18 = scalar_lea.vmem [#allocation5], %s2841_s0 }
  0x7d   : > { %s465_s17 = scalar_lea.sflag [#allocation6], %s464_s23 }
  0x7e   : > { %2571 = dma.done.wait (%p3154_p13), %s465_s17, 32  }
  0x7f   : > { %2573 = vsyncadd (%p3154_p13), %s465_s17, 4294967264  ;;  %p536_p1 = scmp.lt.s32.totalorder %s2691_s25, 1  ;;  %v554_v0 = vlaneseq  ;;  %vm579_vm0 = vcmask 130048   ;;  %v549_v8 = vld [vmem:[%s2845_s19] sm:$0xff]  ;;  %v2599_v13 = vmov 0.0   ;;  %v550_v31 = vld [vmem:[%s2845_s19 + $0x8] sm:$0xff] }
  0x80   : > { %2176 = vmatprep.mubr.msk.f32.mxu0 %vm579_vm0, %v549_v8  ;;  %2183 = vmatprep.mubr.msk.f32.mxu1 %vm579_vm0, %v549_v8  ;;  %v916_v35 = vpack.c.bf16 %v550_v31, %v549_v8  ;;  %vm2600_vm9 = vmmov 0   ;;  %v553_v36 = vld [vmem:[%s3113_s7] sm:$0xff]  ;;  %v2601_v37 = vmov 0   ;;  %v2602_v39 = vmov 0.0|0.0   ;;  %s475_s17 = scalar_lea.vmem [#allocation7], %s2841_s0  ;;  %s3155_s24 = sld [smem:[#allocation21_spill]] }
  0x81   : > { %s2859_s21 = scalar_select %p536_p1, %s2691_s25, 1  ;;  %v2861_v1 = vshrl.u32 %v554_v0, 7  ;;  %2427 = vset.pattern.permute.xlu0 %v2601_v37  ;;  %v1065_v38 = vld [vmem:[%s3115_s9] sm:$0xff]  ;;  %vm926_vm10 = vcmask 654336   ;;  %v2603_v62 = vmov 1.0|1.0  }
  0x82   : > { %923 = vperm.xlu0 %2427, %v553_v36   ;;  %v1514_v40 = vld [vmem:[%s3117_s11] sm:$0xff]  ;;  %s3156_s30 = sld [smem:[#allocation17_spill]]  ;;  %s2042_s29 = sshll.u32 %s2841_s0, 3 }
  0x83   : > { %s2043_s3 = sshll.u32 %s2859_s21, 2  ;;  %v559_v2 = vsub.s32 0, %v2861_v1  ;;  %v569_v3 = vsub.s32 2, %v2861_v1  ;;  %v742_v4 = vsub.s32 1, %v2861_v1  ;;  %v752_v5 = vsub.s32 3, %v2861_v1  ;;  %s2045_s23 = sshll.u32 %s2859_s21, 3 }
  0x84   : > { %s539_s28 = scalar_lea.vmem %s3107_s1, %s2043_s3  ;;  %v2874_v6 = vadd.s32 8, %v2861_v1  ;;  %v552_v57 = vld [vmem:[%s3112_s6] sm:$0xf]  ;;  %s543_s19 = scalar_lea.vmem %s3108_s2, %s2043_s3 }
  0x85   : > { %v551_v7 = vld [vmem:[%s539_s28] sm:$0xf]  ;;  %s547_s12 = scalar_lea.vmem %s3111_s5, %s2045_s23  ;;  %s2097_s14 = sshll.u32 %s2691_s25, 7 }
  0x86   : > { %v560_v9 = vrot.slane %v551_v7, %v559_v2  ;;  %v570_v10 = vrot.slane %v551_v7, %v569_v3  ;;  %v743_v11 = vrot.slane %v551_v7, %v742_v4  ;;  %v753_v12 = vrot.slane %v551_v7, %v752_v5  ;;  %1449 = vperm.xlu0 %2427, %v1065_v38   ;;  %v1063_v58 = vld [vmem:[%s543_s19] sm:$0xf]  ;;  %s535_s16 = scalar_lea.vmem [#allocation8], %s2042_s29  ;;  %s3157_s15 = sld [smem:[#allocation22_spill]] }
  0x87   : > { %v2063_v59 = vld [vmem:[%s467_s18] ss:$0 sm:$0xff]  ;;  %v1070_v60 = vrot.slane %v1063_v58, %v559_v2  ;;  %v1083_v61 = vrot.slane %v1063_v58, %v569_v3  ;;  %s1889_s26 = sshll.u32 %s535_s16, 4  ;;  %s1876_s23 = scalar_lea.sflag [#allocation4], %s2841_s0  ;;  %s3063_s26 = int_to_ptr.vmem [resolvable:$true] %s1889_s26 }
  0x88   : > { %vm561_vm1 = vcmp.eq.s32.totalorder %v2861_v1, %v560_v9  ;;  %vm562_vm2 = vcmp.eq.s32.totalorder %v2874_v6, %v560_v9  ;;  %vm571_vm3 = vcmp.eq.s32.totalorder %v2861_v1, %v570_v10  ;;  %vm572_vm4 = vcmp.eq.s32.totalorder %v2874_v6, %v570_v10  ;;  %p3158_p6 = scmp.ne.s32.totalorder %s3156_s30, 0  ;;  %s2604_s25 = smov [#allocation8]  }
  0x89   : > { %v2046_v14 = vsel %vm561_vm1, 1.0, %v2599_v13  ;;  %v2047_v15 = vsel %vm562_vm2, 1.0, %v2599_v13  ;;  %v2048_v16 = vsel %vm571_vm3, 1.0, %v2599_v13  ;;  %v2049_v17 = vsel %vm572_vm4, 1.0, %v2599_v13  ;;  %s2526_s18 = sshll.u32 %s2604_s25, 4  ;;  %s2527_s18 = int_to_ptr.vmem [resolvable:$false] %s2526_s18 }
  0x8a   : > { %v577_v18 = vadd.f32 %v2048_v16, %v2046_v14  ;;  %v578_v19 = vadd.f32 %v2049_v17, %v2047_v15  ;;  %vm744_vm5 = vcmp.eq.s32.totalorder %v2861_v1, %v743_v11  ;;  %vm745_vm6 = vcmp.eq.s32.totalorder %v2874_v6, %v743_v11  ;;  %1805 = vperm.xlu0 %2427, %v1514_v40   ;;  %s2528_s3 = scalar_lea.vmem %s2527_s18, 256  ;;  %p2529_p3 = scmp.lt.s32.totalorder %s3063_s26, %s2527_s18 }
  0x8b   : > { %v2054_v20 = vsel %vm744_vm5, 1.0, %v2599_v13  ;;  %v2055_v21 = vsel %vm745_vm6, 1.0, %v2599_v13  ;;  %vm754_vm7 = vcmp.eq.s32.totalorder %v2861_v1, %v753_v12  ;;  %vm755_vm8 = vcmp.eq.s32.totalorder %v2874_v6, %v753_v12 }
  0x8c   : > { %v2317_v22 = vpack.c.bf16 %v578_v19, %v577_v18  ;;  %v2056_v23 = vsel %vm754_vm7, 1.0, %v2599_v13  ;;  %v2057_v24 = vsel %vm755_vm8, 1.0, %v2599_v13  ;;  %v661_v25 = vsub.f32 %v2046_v14, %v2048_v16  ;;  %s3061_s19 = scalar_lea.hbm %s3157_s15, %s2097_s14 }
  0x8d   : > { %v760_v26 = vadd.f32 %v2056_v23, %v2054_v20  ;;  %v761_v27 = vadd.f32 %v2057_v24, %v2055_v21  ;;  %v662_v28 = vsub.f32 %v2047_v15, %v2049_v17  ;;  %v837_v29 = vsub.f32 %v2054_v20, %v2056_v23 }
  0x8e   : > { %2318 = vmatprep.subr.bf16.mxu0 %v2317_v22  ;;  %v838_v30 = vsub.f32 %v2055_v21, %v2057_v24  ;;  %vm976_vm11 = vcmp.eq.s32.totalorder %v2861_v1, %v2063_v59  ;;  %vm977_vm12 = vcmp.eq.s32.totalorder %v2874_v6, %v2063_v59  ;;  %vm1071_vm14 = vcmp.eq.s32.totalorder %v2861_v1, %v1070_v60 }
  0x8f   : > { %2320 = vmatpush3.bf16.msra.mxu0 %v2317_v22  ;;  %v2325_v32 = vpack.c.bf16 %v761_v27, %v760_v26  ;;  %v2321_v33 = vpack.c.bf16 %v662_v28, %v661_v25  ;;  %vm2334_vm13 = vmpackc.low %vm977_vm12, %vm976_vm11  ;;  %vm1072_vm15 = vcmp.eq.s32.totalorder %v2874_v6, %v1070_v60  ;;  %vm1084_vm1 = vcmp.eq.s32.totalorder %v2861_v1, %v1083_v61  ;;  %v2069_v27 = vld [vmem:[%s475_s17] ss:$0 sm:$0xff]  ;;  %s2522_s17 = scalar_lea.vmem %s3063_s26, 128 }
  0x90   : > { %v2329_v34 = vpack.c.bf16 %v838_v30, %v837_v29  ;;  %vm1085_vm2 = vcmp.eq.s32.totalorder %v2874_v6, %v1083_v61  ;;  %v2070_v63 = vsel %vm1071_vm14, 1.0, %v2599_v13  ;;  %v2071_v0 = vsel %vm1072_vm15, 1.0, %v2599_v13  ;;  %p2523_p5 = scmp.ne.s32.totalorder %s3063_s26, %s2522_s17  ;;  %p2530_p8 = scmp.lt.s32.totalorder %s2528_s3, %s2522_s17 }
  0x91   : > { %2326 = vmatprep.subr.bf16.mxu0 %v2325_v32  ;;  %2322 = vmatprep.subr.bf16.mxu1 %v2321_v33  ;;  %v2073_v2 = vsel %vm1084_vm1, 1.0, %v2599_v13  ;;  %v2074_v7 = vsel %vm1085_vm2, 1.0, %v2599_v13  ;;  %v1066_v17 = vadd.s32 16, %v2861_v1  ;;  %v1261_v25 = vrot.slane %v1063_v58, %v742_v4 }
  0x92   : > { %2177 = vmatmul.mubr.msk.f32.vlgmr.msra.gmra.mrb[0].mxu0 %vm579_vm0, %v550_v31  ;;  %2324 = vmatpush3.bf16.msra.mxu1 %v2321_v33  ;;  %v1093_v3 = vadd.f32 %v2073_v2, %v2070_v63  ;;  %v1178_v21 = vsub.f32 %v2070_v63, %v2073_v2  ;;  %v1179_v22 = vsub.f32 %v2071_v0, %v2074_v7  ;;  %vm1096_vm8 = vcmask 195584   ;;  %p2524_p9 = pnand %p2523_p5, %p3158_p6  ;;  %p2531_p10 = por %p2530_p8, %p2529_p3 }
  0x93   : > { %2328 = vmatpush3.bf16.msra.mxu0 %v2325_v32  ;;  %2190 = vmatprep.mubr.msk.f32.mxu0 %vm579_vm0, %v549_v8  ;;  %vm1073_vm3 = vcmp.eq.s32.totalorder %v1066_v17, %v1070_v60  ;;  %vm1086_vm4 = vcmp.eq.s32.totalorder %v1066_v17, %v1083_v61  ;;  %v1274_v26 = vrot.slane %v1063_v58, %v752_v5  ;;  %v1062_v32 = vld [vmem:[%s547_s12] sm:$0xff] }
  0x94   : > { %2330 = vmatprep.subr.bf16.mxu1 %v2329_v34  ;;  %2200 = vmatprep.subr.bf16.mxu0 %v2599_v13  ;;  %v2072_v18 = vsel %vm1073_vm3, 1.0, %v2599_v13  ;;  %v2075_v19 = vsel %vm1086_vm4, 1.0, %v2599_v13  ;;  %v2962_v23 = vpack.c.bf16 %v1179_v22, %v1178_v21  ;;  %vm1263_vm5 = vcmp.eq.s32.totalorder %v2874_v6, %v1261_v25  ;;  %v1064_v60 = vld [vmem:[%s3114_s8] sm:$0xf]  ;;  %p2525_p12 = pneg %p2524_p9 }
  0x95   : > { %2184 = vmatmul.mubr.msk.f32.vlgmr.msra.gmra.mrb[0].mxu1 %vm579_vm0, %v550_v31  ;;  %v1095_v20 = vadd.f32 %v2075_v19, %v2072_v18  ;;  %v2966_v24 = vsub.f32 %v2072_v18, %v2075_v19  ;;  %vm1275_vm6 = vcmp.eq.s32.totalorder %v2861_v1, %v1274_v26  ;;  %vm1276_vm7 = vcmp.eq.s32.totalorder %v2874_v6, %v1274_v26 }
  0x96   : > { %2191 = vmatmul.mubr.msk.f32.vlgmr.msra.gmra.mrb[2].mxu0 %vm579_vm0, %v550_v31  ;;  %2332 = vmatpush3.bf16.msra.mxu1 %v2329_v34  ;;  %v2081_v28 = vsel %vm1263_vm5, 1.0, %v2599_v13  ;;  %v2083_v5 = vsel %vm1275_vm6, 1.0, %v2599_v13  ;;  %v2084_v29 = vsel %vm1276_vm7, 1.0, %v2599_v13  ;;  %vm1264_vm11 = vcmp.eq.s32.totalorder %v1066_v17, %v1261_v25  ;;  %p2532_p11 = pnand %p2531_p10, %p2525_p12 }
  0x97   : > { %2197 = vmatprep.mubr.msk.f32.mxu1 %vm579_vm0, %v549_v8  ;;  %2201 = vmatpush3.bf16.msra.mxu0 %v916_v35  ;;  %v1094_v8 = vadd.f32 %v2074_v7, %v2071_v0  ;;  %v1285_v33 = vadd.f32 %v2084_v29, %v2081_v28  ;;  %vm1277_vm12 = vcmp.eq.s32.totalorder %v1066_v17, %v1274_v26  ;;  %v2082_v34 = vsel %vm1264_vm11, 1.0, %v2599_v13 }
  0x98   : > { %2202 = vmatprep.subr.bf16.mxu0 %v2599_v13  ;;  %2210 = vmatprep.mubr.msk.bf16.mxu0 %vm2600_vm9, %v2599_v13  ;;  %v2085_v35 = vsel %vm1277_vm12, 1.0, %v2599_v13  ;;  %v1363_v40 = vsub.f32 %v2081_v28, %v2084_v29 }
  0x99   : > { %2198 = vmatmul.mubr.msk.f32.vlgmr.msra.gmra.mrb[2].mxu1 %vm579_vm0, %v550_v31  ;;  %2333 = vmatprep.subr.bf16.mxu1 %v2602_v39  ;;  %v2336_v9 = vpack.c.bf16 %v1094_v8, %v1093_v3  ;;  %v2994_v37 = vadd.f32 %v2085_v35, %v2082_v34 }
  0x9a   : > { %2218 = vmatprep.mubr.msk.f32.mxu1 %vm2600_vm9, %v2599_v13  ;;  %2335 = vmatpush3.bf16.msk.msra.mxu1 %vm2334_vm13, %v2603_v62 }
  0x9b   : > { %2337 = vmatprep.subr.bf16.mxu1 %v2336_v9 }
 0x101   : > { %v924_v10 = vpop.permute.xlu0 %923 }
 0x105   : > { %v1450_v61 = vpop.permute.xlu0 %1449 }
 0x165   : > { %v2178_v41 = vpop.f32.mrb[0].mxu0 }
 0x166   : > { %v652_v42 = vpop.f32.mrb[1].mxu0 }
 0x167   : > { %v917_v43 = vpack.c.bf16 %v2178_v41, %v652_v42  ;;  %v1364_v42 = vsub.f32 %v2082_v34, %v2085_v35 }
 0x168   : > { %v2185_v44 = vpop.f32.mrb[0].mxu1 }
 0x169   : > { %v2192_v45 = vpop.f32.mrb[2].mxu0  ;;  %2203 = vmatpush3.bf16.msra.mxu0 %v917_v43  ;;  %v739_v46 = vand.u32 2147483647, %v2185_v44  ;;  %v729_v47 = vpop.f32.mrb[1].mxu1 }
 0x16a   : > { %v828_v48 = vpop.f32.mrb[3].mxu0  ;;  %v738_v49 = vand.u32 2147483647, %v729_v47  ;;  %2204 = vmatprep.subr.bf16.mxu0 %v2599_v13 }
 0x16b   : > { %v918_v50 = vpack.c.bf16 %v2192_v45, %v828_v48 }
 0x16c   : > { %v919_v51 = vpack.c.bf16 %v739_v46, %v738_v49  ;;  %v2199_v52 = vpop.f32.mrb[2].mxu1 }
 0x16d   : > { %2205 = vmatpush3.bf16.msra.mxu0 %v918_v50  ;;  %v915_v53 = vand.u32 2147483647, %v2199_v52  ;;  %v905_v54 = vpop.f32.mrb[3].mxu1 }
 0x16e   : > { %v914_v55 = vand.u32 2147483647, %v905_v54  ;;  %2206 = vmatprep.subr.bf16.mxu0 %v2599_v13 }
 0x170   : > { %v920_v56 = vpack.c.bf16 %v915_v53, %v914_v55 }
 0x171   : > { %2207 = vmatpush3.bf16.msra.mxu0 %v919_v51 }
 0x172   : > { %2208 = vmatprep.subr.bf16.mxu0 %v2599_v13 }
 0x175   : > { %2209 = vmatpush3.bf16.msra.mxu0 %v920_v56 }
 0x176   : > { %2352 = vmatprep.subr.bf16.mxu0 %v2602_v39 }
 0x178   : > { %2211 = vmatmul.mubr.msk.bf16.vlgmr.msra.gmra.mrb[4].mxu0 %vm926_vm10, %v552_v57 }
 0x179   : > { %2277 = vmatprep.mubr.msk.f32.mxu0 %vm2600_vm9, %v2599_v13  ;;  %2354 = vmatpush3.bf16.msra.mxu0 %v2336_v9 }
 0x17a   : > { %2275 = vmatprep.subr.mxu0 %v2599_v13 }
 0x17d   : > { %2276 = vmatpush3.msra.mxu0 %v1095_v20 }
 0x17e   : > { %2355 = vmatprep.subr.bf16.mxu0 %v2602_v39 }
 0x24b   : > { %v964_v11 = vpop.f32.mrb[4].mxu0 }
 0x24c   : > { %v965_v12 = vadd.f32 %v964_v11, %v924_v10  ;;  %v2212_v14 = vpop.f32.mrb[5].mxu0 }
 0x24d   : > { %v967_v15 = vpop.f32.mrb[6].mxu0 }
 0x24e   : > { %v2213_v16 = vpop.f32.mrb[7].mxu0  ;;  %2219 = vmatmul.mubr.msk.f32.vlgmr.msra.gmra.mrb[4].mxu1 %vm579_vm0, %v965_v12  ;;  %vm1262_vm0 = vcmp.eq.s32.totalorder %v2861_v1, %v1261_v25 }
 0x24f   : > { %2339 = vmatpush3.bf16.msra.mxu1 %v2336_v9  ;;  %v2080_v4 = vsel %vm1262_vm0, 1.0, %v2599_v13 }
 0x250   : > { %2225 = vmatprep.subr.mxu1 %v1095_v20  ;;  %v1284_v6 = vadd.f32 %v2083_v5, %v2080_v4  ;;  %v1362_v38 = vsub.f32 %v2080_v4, %v2083_v5 }
 0x252   : > { %v2992_v36 = vpack.c.bf16 %v1285_v33, %v1284_v6  ;;  %v2348_v41 = vpack.c.bf16 %v1363_v40, %v1362_v38  ;;  %v1513_v6 = vld [vmem:[%s3155_s24] sm:$0xf]  ;;  %v1806_v33 = vpop.permute.xlu0 %1805 }
 0x253   : > { %2226 = vmatpush3.msra.mxu1 %v1095_v20 }
 0x254   : > { %2341 = vmatprep.subr.bf16.mxu1 %v2962_v23 }
 0x321   : > { %v1051_v30 = vpop.f32.mrb[4].mxu1 }
 0x322   : > { %v1061_v31 = vmul.f32 %v2069_v27, %v1051_v30  ;;  %v2220_v1 = vpop.f32.mrb[5].mxu1 }
 0x324   : > { %2227 = vmatprep.mubr.msk.f32.mxu1 %vm1096_vm8, %v1061_v31  ;;  %v1442_v43 = vpack.c.bf16 %v1062_v32, %v1061_v31 }
 0x325   : > { %2228 = vmatmul.mubr.msk.f32.vlgmr.msra.gmra.mrb[6].mxu1 %vm1096_vm8, %v1062_v32 }
 0x326   : > { %2343 = vmatpush3.bf16.msra.mxu1 %v2962_v23  ;;  %2236 = vmatprep.mubr.msk.f32.mxu1 %vm1096_vm8, %v1061_v31 }
 0x327   : > { %2234 = vmatprep.subr.mxu1 %v2966_v24 }
 0x32a   : > { %2235 = vmatpush3.msra.mxu1 %v2966_v24 }
 0x32b   : > { %2237 = vmatmul.mubr.msk.f32.vlgmr.msra.gmra.mrb[8].mxu1 %vm1096_vm8, %v1062_v32  ;;  %2345 = vmatprep.subr.bf16.mxu1 %v2992_v36 }
 0x32c   : > { %2347 = vmatpush3.bf16.msra.mxu1 %v2992_v36  ;;  %2245 = vmatprep.mubr.msk.f32.mxu1 %vm1096_vm8, %v1061_v31 }
 0x32d   : > { %2243 = vmatprep.subr.mxu1 %v2994_v37 }
 0x330   : > { %2244 = vmatpush3.msra.mxu1 %v2994_v37 }
 0x331   : > { %2246 = vmatmul.mubr.msk.f32.vlgmr.msra.gmra.mrb[10].mxu1 %vm1096_vm8, %v1062_v32  ;;  %2349 = vmatprep.subr.bf16.mxu1 %v2348_v41 }
 0x332   : > { %2351 = vmatpush3.bf16.msra.mxu1 %v2348_v41  ;;  %2254 = vmatprep.mubr.msk.f32.mxu1 %vm1096_vm8, %v1061_v31 }
 0x333   : > { %2252 = vmatprep.subr.mxu1 %v1364_v42 }
 0x336   : > { %2253 = vmatpush3.msra.mxu1 %v1364_v42 }
 0x337   : > { %2255 = vmatmul.mubr.msk.f32.vlgmr.msra.gmra.mrb[12].mxu1 %vm1096_vm8, %v1062_v32  ;;  %2257 = vmatprep.subr.bf16.mxu1 %v2599_v13 }
 0x338   : > { %2258 = vmatpush3.bf16.msra.mxu1 %v1442_v43  ;;  %2267 = vmatprep.mubr.msk.bf16.mxu1 %vm2600_vm9, %v2599_v13 }
 0x339   : > { %2259 = vmatprep.subr.bf16.mxu1 %v2599_v13 }
 0x3f8   : > { %v2229_v44 = vpop.f32.mrb[6].mxu1 }
 0x3f9   : > { %v1169_v45 = vpop.f32.mrb[7].mxu1 }
 0x3fa   : > { %v1443_v46 = vpack.c.bf16 %v2229_v44, %v1169_v45 }
 0x3fc   : > { %2260 = vmatpush3.bf16.msra.mxu1 %v1443_v46 }
 0x3fd   : > { %2261 = vmatprep.subr.bf16.mxu1 %v2599_v13 }
 0x3fe   : > { %v2238_v47 = vpop.f32.mrb[8].mxu1 }
 0x3ff   : > { %v1257_v48 = vand.u32 2147483647, %v2238_v47  ;;  %v1247_v49 = vpop.f32.mrb[9].mxu1 }
 0x400   : > { %v1256_v50 = vand.u32 2147483647, %v1247_v49 }
 0x402   : > { %v1445_v51 = vpack.c.bf16 %v1257_v48, %v1256_v50 }
 0x404   : > { %v2247_v52 = vpop.f32.mrb[10].mxu1 }
 0x405   : > { %v1353_v53 = vpop.f32.mrb[11].mxu1 }
 0x406   : > { %v1444_v54 = vpack.c.bf16 %v2247_v52, %v1353_v53 }
 0x408   : > { %2262 = vmatpush3.bf16.msra.mxu1 %v1444_v54 }
 0x409   : > { %2263 = vmatprep.subr.bf16.mxu1 %v2599_v13 }
 0x40a   : > { %v2256_v55 = vpop.f32.mrb[12].mxu1 }
 0x40b   : > { %v1441_v56 = vand.u32 2147483647, %v2256_v55  ;;  %v1431_v57 = vpop.f32.mrb[13].mxu1 }
 0x40c   : > { %v1440_v58 = vand.u32 2147483647, %v1431_v57  ;;  %2264 = vmatpush3.bf16.msra.mxu1 %v1445_v51 }
 0x40d   : > { %2265 = vmatprep.subr.bf16.mxu1 %v2599_v13 }
 0x40e   : > { %v1446_v59 = vpack.c.bf16 %v1441_v56, %v1440_v58 }
 0x410   : > { %2266 = vmatpush3.bf16.msra.mxu1 %v1446_v59 }
 0x411   : > { %2361 = vmatprep.subr.bf16.mxu1 %v2602_v39 }
 0x413   : > { %2268 = vmatmul.mubr.msk.bf16.vlgmr.msra.gmra.mrb[16].mxu1 %vm926_vm10, %v1064_v60  ;;  %vm1812_vm10 = vcmask 1043456  }
 0x414   : > { %2363 = vmatpush3.bf16.msra.mxu1 %v2348_v41  ;;  %2304 = vmatprep.mubr.msk.f32.mxu1 %vm2600_vm9, %v2599_v13 }
 0x415   : > { %2302 = vmatprep.subr.mxu1 %v2599_v13 }
 0x418   : > { %2303 = vmatpush3.msra.mxu1 %v1364_v42 }
 0x4e6   : > { %v1489_v62 = vpop.f32.mrb[16].mxu1 }
 0x4e7   : > { %v1490_v63 = vadd.f32 %v1489_v62, %v1450_v61  ;;  %v2269_v0 = vpop.f32.mrb[17].mxu1 }
 0x4e8   : > { %v1492_v2 = vpop.f32.mrb[18].mxu1 }
 0x4e9   : > { %v2270_v7 = vpop.f32.mrb[19].mxu1  ;;  %v1495_v3 = vsel %vm1096_vm8, %v1490_v63, 0.0  ;;  %v1500_v8 = vmul.f32 %v1490_v63, %v1490_v63 }
 0x4ea   : > { %1496 = vadd.xlane.f32.xlu1 %v1495_v3 }
 0x4eb   : > { %v1501_v9 = vsel %vm1096_vm8, %v1500_v8, 0.0 }
 0x4ee   : > { %1502 = vadd.xlane.f32.xlu1 %v1501_v9 }
 0x577   : > { %v1497_v10 = vpop.xlane.xlu1 %1496 }
 0x578   : > { %v1499_v11 = vmul.f32 0.041666668, %v1497_v10 }
 0x57a   : > { %v1505_v14 = vmul.f32 %v1499_v11, %v1499_v11  ;;  %v1508_v19 = vsub.f32 %v1490_v63, %v1499_v11 }
 0x57b   : > { %v1503_v12 = vpop.xlane.xlu1 %1502 }
 0x57c   : > { %v1504_v15 = vmul.f32 0.041666668, %v1503_v12 }
 0x57e   : > { %v1506_v16 = vsub.f32 %v1504_v15, %v1505_v14 }
 0x580   : > { %v1507_v17 = vmax.f32 %v1506_v16, 0.0 }
 0x582   : > { %v1509_v18 = vadd.f32 1e-05, %v1507_v17 }
 0x584   : > { %2428 = vrsqrt.f32 %v1509_v18 }
 0x58e   : > { %v2429_v20 = vpop.eup %2428 }
 0x58f   : > { %v1511_v21 = vmul.f32 %v2429_v20, %v1508_v19 }
 0x591   : > { %v3023_v22 = vmax.f32 %v1511_v21, 0.0 }
 0x593   : > { %2278 = vmatmul.mubr.msk.f32.vlgmr.msra.gmra.mrb[8].mxu0 %vm1096_vm8, %v3023_v22  ;;  %2305 = vmatmul.mubr.msk.f32.vlgmr.msra.gmra.mrb[14].mxu1 %vm1096_vm8, %v3023_v22 }
 0x594   : > { %2357 = vmatpush3.bf16.msra.mxu0 %v2962_v23  ;;  %2286 = vmatprep.mubr.msk.f32.mxu0 %vm2600_vm9, %v2599_v13 }
 0x595   : > { %2284 = vmatprep.subr.mxu0 %v2599_v13 }
 0x598   : > { %2285 = vmatpush3.msra.mxu0 %v2966_v24 }
 0x599   : > { %2287 = vmatmul.mubr.msk.f32.vlgmr.msra.gmra.mrb[10].mxu0 %vm1096_vm8, %v3023_v22  ;;  %2358 = vmatprep.subr.bf16.mxu0 %v2602_v39 }
 0x59a   : > { %2360 = vmatpush3.bf16.msra.mxu0 %v2992_v36  ;;  %2295 = vmatprep.mubr.msk.f32.mxu0 %vm2600_vm9, %v2599_v13 }
 0x59b   : > { %2293 = vmatprep.subr.mxu0 %v2599_v13 }
 0x59e   : > { %2294 = vmatpush3.msra.mxu0 %v2994_v37 }
 0x59f   : > { %2296 = vmatmul.mubr.msk.f32.vlgmr.msra.gmra.mrb[12].mxu0 %vm1096_vm8, %v3023_v22  ;;  %2307 = vmatprep.subr.bf16.mxu0 %v2599_v13 }
 0x5a0   : > { %2313 = vmatprep.mubr.msk.bf16.mxu0 %vm2600_vm9, %v2599_v13  ;;  %vm1808_vm9 = vcmask 326656  }
 0x666   : > { %v1584_v23 = vpop.f32.mrb[8].mxu0  ;;  %v1795_v24 = vpop.f32.mrb[14].mxu1 }
 0x667   : > { %v1800_v39 = vpack.c.bf16 %v1584_v23, %v3023_v22  ;;  %v2279_v25 = vpop.f32.mrb[9].mxu0  ;;  %v2306_v26 = vpop.f32.mrb[15].mxu1  ;;  %v1799_v28 = vand.u32 2147483647, %v1795_v24 }
 0x669   : > { %2308 = vmatpush3.bf16.msra.mxu0 %v1800_v39  ;;  %v1802_v1 = vpack.c.bf16 %v1799_v28, %v1799_v28 }
 0x66a   : > { %2309 = vmatprep.subr.bf16.mxu0 %v2599_v13 }
 0x66b   : > { %v1814_v32 = vsel %vm1812_vm10, %v1802_v1, 0 }
 0x66c   : > { %v1654_v27 = vpop.f32.mrb[10].mxu0 }
 0x66d   : > { %v2288_v4 = vpop.f32.mrb[11].mxu0  ;;  %v1658_v5 = vand.u32 2147483647, %v1654_v27 }
 0x672   : > { %v1725_v29 = vpop.f32.mrb[12].mxu0 }
 0x673   : > { %v1801_v30 = vpack.c.bf16 %v1658_v5, %v1725_v29  ;;  %v2297_v31 = vpop.f32.mrb[13].mxu0 }
 0x675   : > { %2310 = vmatpush3.bf16.msra.mxu0 %v1801_v30 }
 0x676   : > { %2311 = vmatprep.subr.bf16.mxu0 %v2599_v13 }
 0x679   : > { %2312 = vmatpush3.bf16.msra.mxu0 %v1814_v32 }
 0x67c   : > { %2314 = vmatmul.mubr.msk.bf16.vlgmr.msra.gmra.mrb[16].mxu0 %vm1808_vm9, %v1513_v6 }
 0x74f   : > { %v1850_v34 = vpop.f32.mrb[16].mxu0 }
 0x750   : > { %v1851_v35 = vadd.f32 %v1850_v34, %v1806_v33  ;;  %v2315_v36 = vpop.f32.mrb[17].mxu0 }
 0x751   : > { %v1853_v37 = vpop.f32.mrb[18].mxu0 }
 0x752   : > { %v2316_v38 = vpop.f32.mrb[19].mxu0  ;;  %v1856_v40 = vsel %vm1096_vm8, %v1851_v35, 0.0  ;;  %v1860_v41 = vmul.f32 %v1851_v35, %v1851_v35 }
 0x753   : > { %1857 = vadd.xlane.f32.xlu1 %v1856_v40 }
 0x754   : > { %v1861_v13 = vsel %vm1096_vm8, %v1860_v41, 0.0 }
 0x755   : > { %1862 = vadd.xlane.f32.xlu0 %v1861_v13 }
 0x7e0   : > { %v1858_v42 = vpop.xlane.xlu1 %1857 }
 0x7e1   : > { %v1859_v43 = vmul.f32 0.041666668, %v1858_v42 }
 0x7e2   : > { %v1863_v44 = vpop.xlane.xlu0 %1862 }
 0x7e3   : > { %v1865_v45 = vmul.f32 %v1859_v43, %v1859_v43  ;;  %v1864_v46 = vmul.f32 0.041666668, %v1863_v44  ;;  %v1868_v50 = vsub.f32 %v1851_v35, %v1859_v43 }
 0x7e5   : > { %v1866_v47 = vsub.f32 %v1864_v46, %v1865_v45 }
 0x7e7   : > { %v1867_v48 = vmax.f32 %v1866_v47, 0.0 }
 0x7e9   : > { %v1869_v49 = vadd.f32 1e-05, %v1867_v48 }
 0x7eb   : > { %2430 = vrsqrt.f32 %v1869_v49 }
 0x7f5   : > { %v2431_v51 = vpop.eup %2430 }
 0x7f6   : > { %v1871_v52 = vmul.f32 %v2431_v51, %v1868_v50 }
 0x7f8   : > { %v1872_v53 = vadd.f32 %v1871_v52, %v3023_v22 }
 0x7fa   : > { %v1873_v54 = vmax.f32 %v1872_v53, 0.0 }
 0x7fc   : > { %1874 = vst.msk [vmem:[%s535_s16] sm:$0xff] %vm1096_vm8, %v1873_v54 }
 0x7fd   : > { %2535 = shalt.err (!%p2532_p11)
}
 0x7fe   : > { %s2536_s0 = scalar_lea.hbm %s3061_s19, 128  ;;  %s2540_s13 = scalar_lea.hbm %s3157_s15, 256 }
 0x7ff   : > { %p2537_p7 = scmp.ne.s32.totalorder %s3061_s19, %s2536_s0  ;;  %p2541_p0 = scmp.lt.u32.totalorder %s3061_s19, %s3157_s15 }
 0x800   : > { %p2542_p13 = scmp.lt.u32.totalorder %s2540_s13, %s2536_s0  ;;  %p2544_p5 = scmp.lt.u32.totalorder %s2536_s0, %s3061_s19 }
 0x801   : > { %p2538_p2 = pnand %p2537_p7, %p3158_p6 }
 0x802   : > { %p2543_p1 = por %p2542_p13, %p2541_p0 }
 0x803   : > { %p2539_p4 = pneg %p2538_p2 }
 0x804   : > { %p2545_p9 = por %p2544_p5, %p2543_p1 }
 0x806   : > { %p2546_p12 = pnand %p2545_p9, %p2539_p4 }
 0x808   : > { %2549 = shalt.err (!%p2546_p12)
}
 0x809   : > { %2370 = dma.vmem_to_hbm [thread:$0]  (%p3158_p6), %s3063_s26, 128, %s3061_s19, %s1876_s23  }
 0x80a PF: > { %s3159_s24 = sld [smem:[#allocation12_spill]]  ;;  %s3160_s29 = sld [smem:[#allocation18_spill]] }
 0x80b   : > { %s3161_s14 = sld [smem:[#allocation14_spill]] }
 0x810   : > { %s1901_s16 = sand.u32 1, %s3159_s24   ;;  %p3162_p3 = scmp.ne.s32.totalorder %s3160_s29, 0 }
 0x811   : > { %p3163_p8 = scmp.ge.s32.totalorder %s3161_s14, 2  ;;  %s1902_s27 = scalar_lea.sflag [#allocation4], %s1901_s16 }
 0x813   : > { %p2383_p10 = pnand %p3163_p8, %p3162_p3 }
 0x815   : > { %2575 = dma.done.wait (!%p2383_p10), %s1902_s27, 128  }
 0x816   : > { %2577 = vsyncadd (!%p2383_p10), %s1902_s27, 4294967168  ;;  %s3164_s24 = sld [smem:[#allocation15_spill]]  ;;  %s3165_s10 = sld [smem:[#allocation13_spill]] }
 0x817   : > { %s3166_s23 = sld [smem:[#allocation16_spill]]  ;;  %s3167_s21 = smov %s2584_s22 }
 0x81c   : > { %p28_p11 = scmp.ge.s32.totalorder %s3164_s24, 4   ;;  %s3168_s22 = smov %s3165_s10 }
 0x81e   :  { %30 = sbr.rel (!%p28_p11) target bundleno = 12 (0xc), region = 146 }
 0x825   :  { %1907 = vsyncpa [#allocation3], 1 }
 0x826   :  { %1909 = vsyncpa [#allocation3 + $0x1], 1 }
 0x827   :  { %1910 = vsyncpa [#allocation6], 1 }
 0x828   :  { %1912 = vsyncpa [#allocation6 + $0x1], 1 }
 0x829   :  { %1913 = vsyncpa [#allocation4], 1 }
 0x82a   :  { %1915 = vsyncpa [#allocation4 + $0x1], 1 }

</bundles_post_ra>
